<compile_context>
chip_gen: v6e
topology: v6e:2x2x1
jax: 0.10.0
libtpu: 0.0.40
codegen_flags: <defaults>
</compile_context>

<pallas_src>
import functools

import jax
import jax.numpy as jnp
from jax.experimental import pallas as pl
from jax.experimental.pallas import tpu as pltpu


# ----------------------------------------------------------------------------
# Pallas kernel: full encoder stack.  Grid = (batch_tiles, num_layers).
# ----------------------------------------------------------------------------
def encoder_stack_kernel(
    x_ref,      # (1, M, E)     bf16 embedded tokens for this batch tile (M=Bt*S)
    bias_ref,   # (1, Bt, S)    f32 additive key-padding bias per batch element
    wqkv_ref,   # (1, E, 3E)    bf16 in_proj_weight^T for current layer
    bqkv_ref,   # (1, 1, 3E)    f32
    wo_ref,     # (1, H, Dh, E) bf16 head-blocked out_proj.weight^T
    bo_ref,     # (1, 1, E)     f32
    g1_ref,     # (1, 1, E)     f32 norm1 gamma
    be1_ref,    # (1, 1, E)     f32 norm1 beta
    w1_ref,     # (1, E, F)     bf16 linear1.weight^T
    b1_ref,     # (1, 1, F)     f32
    w2_ref,     # (1, F, E)     bf16 linear2.weight^T
    b2_ref,     # (1, 1, E)     f32
    g2_ref,     # (1, 1, E)     f32 norm2 gamma
    be2_ref,    # (1, 1, E)     f32 norm2 beta
    o_ref,      # (1, M, E)     f32 output
    x_scr,      # (M, E) f32 activation resident across the layer grid axis
    *,
    num_heads: int,
    seq_len: int,
    batch_in_tile: int,
    eps: float = 1e-5,
):
    layer = pl.program_id(1)
    last_layer = pl.num_programs(1) - 1
    M, E = x_scr.shape
    H, S, Bt = num_heads, seq_len, batch_in_tile
    Dh = E // H
    scale = jnp.float32(1.0 / (Dh ** 0.5))

    # Load activations from HBM only once per batch tile; they stay resident in
    # VMEM scratch across all encoder layers.
    @pl.when(layer == 0)
    def _():
        x_scr[...] = x_ref[0].astype(jnp.float32)

    x = x_scr[...]                               # (M, E) f32

    bqkv = bqkv_ref[0, 0]
    bo = bo_ref[0, 0]
    g1, be1 = g1_ref[0, 0], be1_ref[0, 0]
    b1, b2 = b1_ref[0, 0], b2_ref[0, 0]
    g2, be2 = g2_ref[0, 0], be2_ref[0, 0]
    key_bias = bias_ref[0]                       # (Bt, S) f32
    wo3 = wo_ref[0]                              # (H, Dh, E) bf16

    # ---- fused QKV projection (bf16 MXU inputs, f32 accumulation) ------------
    qkv = jnp.dot(x.astype(jnp.bfloat16), wqkv_ref[0],
                  preferred_element_type=jnp.float32) + bqkv
    q = qkv[:, 0 * E:1 * E] * scale
    k = qkv[:, 1 * E:2 * E]
    v = qkv[:, 2 * E:3 * E]

    # ---- block-diagonal multi-head self-attention ----------------------------
    # Attention is computed per batch element (never across the batch), so there
    # is no (Bt*S)^2 work and no O(N^2) bias.  Heads are batched in single 3-D
    # contractions; the out-projection is a head-batched matmul summed over
    # heads, so every write is lane-dense (no masked partial stores).
    def heads(z):
        # (S, E) -> (H, S, Dh) via major-axis stack of lane slices.
        return jnp.stack([z[:, h * Dh:(h + 1) * Dh] for h in range(H)], axis=0)

    attn_parts = []
    for b in range(Bt):
        r = slice(b * S, (b + 1) * S)
        q3 = heads(q[r]).astype(jnp.bfloat16)    # (H, S, Dh)
        k3 = heads(k[r]).astype(jnp.bfloat16)
        v3 = heads(v[r]).astype(jnp.bfloat16)
        s = jnp.einsum('hqd,hkd->hqk', q3, k3,
                       preferred_element_type=jnp.float32)        # (H, S, S)
        s = s + key_bias[b].reshape(1, 1, S)
        s = s - jnp.max(s, axis=-1, keepdims=True)
        p = jnp.exp(s)
        p = p * pl.reciprocal(jnp.sum(p, axis=-1, keepdims=True), approx=True)
        ctx = jnp.einsum('hqk,hkd->hqd', p.astype(jnp.bfloat16), v3,
                         preferred_element_type=jnp.float32)      # (H, S, Dh)
        ob = jnp.einsum('hqd,hde->hqe', ctx.astype(jnp.bfloat16), wo3,
                        preferred_element_type=jnp.float32).sum(axis=0)
        attn_parts.append(ob)                                     # (S, E)
    attn = attn_parts[0] if Bt == 1 else jnp.concatenate(attn_parts, axis=0)
    attn = attn + bo
    # TODO(synk): dropout on attn / ffn omitted (eval-mode identity).

    # ---- residual + LayerNorm 1 ----------------------------------------------
    h1 = x + attn
    mu = jnp.mean(h1, axis=-1, keepdims=True)
    var = jnp.mean((h1 - mu) ** 2, axis=-1, keepdims=True)
    h1 = (h1 - mu) * jax.lax.rsqrt(var + eps) * g1 + be1

    # ---- feed-forward (ReLU), bf16 matmuls, f32 accumulation -----------------
    ff = jnp.dot(h1.astype(jnp.bfloat16), w1_ref[0],
                 preferred_element_type=jnp.float32) + b1
    ff = jnp.maximum(ff, 0.0)
    ff = jnp.dot(ff.astype(jnp.bfloat16), w2_ref[0],
                 preferred_element_type=jnp.float32) + b2
    # TODO(synk): tile the FFN over F with an inner loop if M*F f32 grows large.

    # ---- residual + LayerNorm 2 ----------------------------------------------
    h2 = h1 + ff
    mu2 = jnp.mean(h2, axis=-1, keepdims=True)
    var2 = jnp.mean((h2 - mu2) ** 2, axis=-1, keepdims=True)
    h2 = (h2 - mu2) * jax.lax.rsqrt(var2 + eps) * g2 + be2

    # Carry to next layer; write back to HBM only once, on the last layer.
    @pl.when(layer < last_layer)
    def _():
        x_scr[...] = h2

    @pl.when(layer == last_layer)
    def _():
        o_ref[0] = h2.astype(o_ref.dtype)


# ----------------------------------------------------------------------------
# Wrapper: one pallas_call for the whole encoder stack.
# ----------------------------------------------------------------------------
def text_encoder_forward(tokens, src_key_padding_mask, params, num_heads,
                         batch_tile=None):
    """tokens: (B, S) int32; src_key_padding_mask: (B, S) bool, True = pad."""
    emb_table = params["embedding"]
    E = emb_table.shape[1]
    B, S = tokens.shape
    if batch_tile is None:
        # >= 2 batch tiles so the "parallel" grid axis can shard across v7x's
        # two TensorCores (larger tiles amortize weight streaming on v5e/v6e).
        batch_tile = B // 2 if (B % 2 == 0 and B >= 2) else B
    Bt = batch_tile
    assert B % Bt == 0
    nb = B // Bt
    M = Bt * S
    layers = params["layers"]
    L = len(layers)
    F = layers[0]["w1"].shape[1]
    H = num_heads
    Dh = E // H

    # Embedding lookup + sqrt(E) scale (tiny gather, plain-JAX glue).
    x = jnp.take(emb_table, tokens, axis=0) * jnp.sqrt(jnp.float32(E))
    x = x.reshape(nb, M, E).astype(jnp.bfloat16)

    # Key-padding additive bias only: (nb, Bt, S).  No O(N^2) bias tensor —
    # the kernel's attention is block-diagonal per batch element.
    # TODO(synk): a fully padded row yields finite uniform attention here,
    # while PyTorch's -inf masking would yield NaN in that degenerate case.
    key_bias = jnp.where(src_key_padding_mask, jnp.float32(-1e9),
                         jnp.float32(0.0)).reshape(nb, Bt, S)

    # Stack per-layer params on a leading layer axis; big matrices -> bf16.
    def stack(name, dtype=None):
        w = jnp.stack([lp[name] for lp in layers], axis=0)
        return w.astype(dtype) if dtype is not None else w

    wqkv = stack("wqkv", jnp.bfloat16)                      # (L, E, 3E)
    wo3 = stack("wo", jnp.bfloat16).reshape(L, H, Dh, E)    # head-blocked
    w1 = stack("w1", jnp.bfloat16)                          # (L, E, F)
    w2 = stack("w2", jnp.bfloat16)                          # (L, F, E)
    bqkv, bo = stack("bqkv"), stack("bo")
    g1, be1 = stack("g1"), stack("be1")
    b1, b2 = stack("b1"), stack("b2")
    g2, be2 = stack("g2"), stack("be2")

    def act_spec():
        return pl.BlockSpec((1, M, E), lambda b, l: (b, 0, 0))

    def w_spec(*tail):
        nd = len(tail)
        return pl.BlockSpec((1,) + tail,
                            lambda b, l, _nd=nd: (l,) + (0,) * _nd)

    in_specs = [
        act_spec(),                                          # x
        pl.BlockSpec((1, Bt, S), lambda b, l: (b, 0, 0)),    # key-pad bias
        w_spec(E, 3 * E), w_spec(1, 3 * E),                  # wqkv, bqkv
        w_spec(H, Dh, E), w_spec(1, E),                      # wo3, bo
        w_spec(1, E), w_spec(1, E),                          # norm1 gamma/beta
        w_spec(E, F), w_spec(1, F),                          # w1, b1
        w_spec(F, E), w_spec(1, E),                          # w2, b2
        w_spec(1, E), w_spec(1, E),                          # norm2 gamma/beta
    ]

    # Explicit VMEM budget: double-buffered bf16 weight blocks + f32 vectors +
    # activation blocks/scratch + intermediate headroom; clamp to v7x's 64 MiB.
    wt = 2 * 2 * (E * 3 * E + E * E + E * F + F * E)
    vec = 2 * 4 * (2 * (3 * E) + 9 * E + 2 * F)
    act = 2 * (M * E * 2) + 2 * (M * E * 4) + 2 * (Bt * S * 4) + M * E * 4
    interm = 4 * 4 * M * max(F, 3 * E)
    vmem_bytes = int(min(max(2 * (wt + vec + act + interm), 32 << 20), 64 << 20))

    kern = functools.partial(encoder_stack_kernel, num_heads=H,
                             seq_len=S, batch_in_tile=Bt)
    out = pl.pallas_call(
        kern,
        out_shape=jax.ShapeDtypeStruct((nb, M, E), jnp.float32),
        grid=(nb, L),
        in_specs=in_specs,
        out_specs=act_spec(),
        scratch_shapes=[pltpu.VMEM((M, E), jnp.float32)],    # resident activation
        compiler_params=pltpu.CompilerParams(
            dimension_semantics=("parallel", "arbitrary"),
            vmem_limit_bytes=vmem_bytes),
    )(x, key_bias,
      wqkv, bqkv, wo3, bo, g1, be1, w1, b1, w2, b2, g2, be2)

    return out.reshape(B, S, E)


# ----------------------------------------------------------------------------
# Deterministic parameter init (shapes follow nn.TransformerEncoderLayer with
# d_model=embed_dim, nhead=num_heads, dim_feedforward=2048 default).
# ----------------------------------------------------------------------------
def init_params(key, vocab_size, embed_dim, num_layers, num_heads, dim_ff):
    keys = jax.random.split(key, 1 + num_layers)
    emb = jax.random.normal(keys[0], (vocab_size, embed_dim),
                            jnp.float32) * 0.02
    emb = emb.at[0].set(0.0)                       # padding_idx = 0
    E, F = embed_dim, dim_ff
    layers = []
    for l in range(num_layers):
        ks = jax.random.split(keys[1 + l], 4)
        layers.append(dict(
            wqkv=jax.random.normal(ks[0], (E, 3 * E), jnp.float32) * 0.02,
            bqkv=jnp.zeros((1, 3 * E), jnp.float32),
            wo=jax.random.normal(ks[1], (E, E), jnp.float32) * 0.02,
            bo=jnp.zeros((1, E), jnp.float32),
            g1=jnp.ones((1, E), jnp.float32),
            be1=jnp.zeros((1, E), jnp.float32),
            w1=jax.random.normal(ks[2], (E, F), jnp.float32) * 0.02,
            b1=jnp.zeros((1, F), jnp.float32),
            w2=jax.random.normal(ks[3], (F, E), jnp.float32) * 0.02,
            b2=jnp.zeros((1, E), jnp.float32),
            g2=jnp.ones((1, E), jnp.float32),
            be2=jnp.zeros((1, E), jnp.float32),
        ))
    return dict(embedding=emb, layers=layers)


if __name__ == "__main__":
    VOCAB, EMBED, LAYERS, HEADS, DIM_FF = 32, 32, 4, 4, 2048
    B, S = 2, 8

    root = jax.random.PRNGKey(0)
    k_params, k_tok = jax.random.split(root)
    params = init_params(k_params, VOCAB, EMBED, LAYERS, HEADS, DIM_FF)

    tokens = jax.random.randint(k_tok, (B, S), 1, VOCAB, dtype=jnp.int32)
    tokens = tokens.at[:, -2:].set(0)              # last 2 positions = padding
    src_key_padding_mask = tokens == 0             # (B, S) bool, True = pad

    out = text_encoder_forward(tokens, src_key_padding_mask, params, HEADS)
    out = jax.block_until_ready(out)

    assert out.shape == (B, S, EMBED), out.shape
    assert bool(jnp.all(jnp.isfinite(out)))
    print("KERNEL_OK")
</pallas_src>

<mosaic_0001>
module attributes {stable_mosaic.version = 11 : i64} {
  func.func @encoder_stack_kernel(%arg0: i32, %arg1: i32, %arg2: memref<1x8x32xbf16, #tpu.memory_space<vmem>>, %arg3: memref<1x1x8xf32, #tpu.memory_space<vmem>>, %arg4: memref<1x32x96xbf16, #tpu.memory_space<vmem>>, %arg5: memref<1x1x96xf32, #tpu.memory_space<vmem>>, %arg6: memref<1x4x8x32xbf16, #tpu.memory_space<vmem>>, %arg7: memref<1x1x32xf32, #tpu.memory_space<vmem>>, %arg8: memref<1x1x32xf32, #tpu.memory_space<vmem>>, %arg9: memref<1x1x32xf32, #tpu.memory_space<vmem>>, %arg10: memref<1x32x2048xbf16, #tpu.memory_space<vmem>>, %arg11: memref<1x1x2048xf32, #tpu.memory_space<vmem>>, %arg12: memref<1x2048x32xbf16, #tpu.memory_space<vmem>>, %arg13: memref<1x1x32xf32, #tpu.memory_space<vmem>>, %arg14: memref<1x1x32xf32, #tpu.memory_space<vmem>>, %arg15: memref<1x1x32xf32, #tpu.memory_space<vmem>>, %arg16: memref<1x8x32xf32, #tpu.memory_space<vmem>>, %arg17: memref<8x32xf32, #tpu.memory_space<vmem>>) attributes {dimension_semantics = [#tpu.dimension_semantics<parallel>, #tpu.dimension_semantics<arbitrary>], iteration_bounds = array<i64: 2, 4>, scalar_prefetch = 0 : i64, scratch_operands = 1 : i64, tpu.core_type = #tpu.core_type<tc>, window_params = [{transform_indices = @transform_0, window_bounds = array<i64: 1, 8, 32>}, {transform_indices = @transform_1, window_bounds = array<i64: 1, 1, 8>}, {transform_indices = @transform_2, window_bounds = array<i64: 1, 32, 96>}, {transform_indices = @transform_3, window_bounds = array<i64: 1, 1, 96>}, {transform_indices = @transform_4, window_bounds = array<i64: 1, 4, 8, 32>}, {transform_indices = @transform_5, window_bounds = array<i64: 1, 1, 32>}, {transform_indices = @transform_6, window_bounds = array<i64: 1, 1, 32>}, {transform_indices = @transform_7, window_bounds = array<i64: 1, 1, 32>}, {transform_indices = @transform_8, window_bounds = array<i64: 1, 32, 2048>}, {transform_indices = @transform_9, window_bounds = array<i64: 1, 1, 2048>}, {transform_indices = @transform_10, window_bounds = array<i64: 1, 2048, 32>}, {transform_indices = @transform_11, window_bounds = array<i64: 1, 1, 32>}, {transform_indices = @transform_12, window_bounds = array<i64: 1, 1, 32>}, {transform_indices = @transform_13, window_bounds = array<i64: 1, 1, 32>}, {transform_indices = @transform_14, window_bounds = array<i64: 1, 8, 32>}]} {
    %c0_i32 = arith.constant 0 : i32
    %0 = arith.cmpi eq, %arg1, %c0_i32 : i32
    %1 = arith.extui %0 : i1 to i32
    %c0_i32_0 = arith.constant 0 : i32
    %2 = arith.cmpi ne, %1, %c0_i32_0 : i32
    scf.if %2 {
      %c0_65 = arith.constant 0 : index
      %c0_66 = arith.constant 0 : index
      %c0_67 = arith.constant 0 : index
      %161 = vector.load %arg2[%c0_65, %c0_66, %c0_67] : memref<1x8x32xbf16, #tpu.memory_space<vmem>>, vector<1x8x32xbf16>
      %162 = vector.shape_cast %161 : vector<1x8x32xbf16> to vector<8x32xbf16>
      %163 = arith.extf %162 : vector<8x32xbf16> to vector<8x32xf32>
      %c0_68 = arith.constant 0 : index
      %c0_69 = arith.constant 0 : index
      %164 = vector.load %arg17[%c0_68, %c0_69] : memref<8x32xf32, #tpu.memory_space<vmem>>, vector<8x32xf32>
      tpu.vector_store %arg17[%c0_68, %c0_69], %163 {strides = array<i32>} : memref<8x32xf32, #tpu.memory_space<vmem>>, vector<8x32xf32>,
    } else {
    }
    %c0 = arith.constant 0 : index
    %c0_1 = arith.constant 0 : index
    %3 = vector.load %arg17[%c0, %c0_1] : memref<8x32xf32, #tpu.memory_space<vmem>>, vector<8x32xf32>
    %c0_2 = arith.constant 0 : index
    %c0_3 = arith.constant 0 : index
    %c0_4 = arith.constant 0 : index
    %4 = vector.load %arg5[%c0_2, %c0_3, %c0_4] : memref<1x1x96xf32, #tpu.memory_space<vmem>>, vector<1x1x96xf32>
    %5 = vector.shape_cast %4 : vector<1x1x96xf32> to vector<96xf32>
    %c0_5 = arith.constant 0 : index
    %c0_6 = arith.constant 0 : index
    %c0_7 = arith.constant 0 : index
    %6 = vector.load %arg7[%c0_5, %c0_6, %c0_7] : memref<1x1x32xf32, #tpu.memory_space<vmem>>, vector<1x1x32xf32>
    %7 = vector.shape_cast %6 : vector<1x1x32xf32> to vector<32xf32>
    %c0_8 = arith.constant 0 : index
    %c0_9 = arith.constant 0 : index
    %c0_10 = arith.constant 0 : index
    %8 = vector.load %arg8[%c0_8, %c0_9, %c0_10] : memref<1x1x32xf32, #tpu.memory_space<vmem>>, vector<1x1x32xf32>
    %9 = vector.shape_cast %8 : vector<1x1x32xf32> to vector<32xf32>
    %c0_11 = arith.constant 0 : index
    %c0_12 = arith.constant 0 : index
    %c0_13 = arith.constant 0 : index
    %10 = vector.load %arg9[%c0_11, %c0_12, %c0_13] : memref<1x1x32xf32, #tpu.memory_space<vmem>>, vector<1x1x32xf32>
    %11 = vector.shape_cast %10 : vector<1x1x32xf32> to vector<32xf32>
    %c0_14 = arith.constant 0 : index
    %c0_15 = arith.constant 0 : index
    %c0_16 = arith.constant 0 : index
    %12 = vector.load %arg11[%c0_14, %c0_15, %c0_16] : memref<1x1x2048xf32, #tpu.memory_space<vmem>>, vector<1x1x2048xf32>
    %13 = vector.shape_cast %12 : vector<1x1x2048xf32> to vector<2048xf32>
    %c0_17 = arith.constant 0 : index
    %c0_18 = arith.constant 0 : index
    %c0_19 = arith.constant 0 : index
    %14 = vector.load %arg13[%c0_17, %c0_18, %c0_19] : memref<1x1x32xf32, #tpu.memory_space<vmem>>, vector<1x1x32xf32>
    %15 = vector.shape_cast %14 : vector<1x1x32xf32> to vector<32xf32>
    %c0_20 = arith.constant 0 : index
    %c0_21 = arith.constant 0 : index
    %c0_22 = arith.constant 0 : index
    %16 = vector.load %arg14[%c0_20, %c0_21, %c0_22] : memref<1x1x32xf32, #tpu.memory_space<vmem>>, vector<1x1x32xf32>
    %17 = vector.shape_cast %16 : vector<1x1x32xf32> to vector<32xf32>
    %c0_23 = arith.constant 0 : index
    %c0_24 = arith.constant 0 : index
    %c0_25 = arith.constant 0 : index
    %18 = vector.load %arg15[%c0_23, %c0_24, %c0_25] : memref<1x1x32xf32, #tpu.memory_space<vmem>>, vector<1x1x32xf32>
    %19 = vector.shape_cast %18 : vector<1x1x32xf32> to vector<32xf32>
    %c0_26 = arith.constant 0 : index
    %c0_27 = arith.constant 0 : index
    %c0_28 = arith.constant 0 : index
    %20 = vector.load %arg3[%c0_26, %c0_27, %c0_28] : memref<1x1x8xf32, #tpu.memory_space<vmem>>, vector<1x1x8xf32>
    %21 = vector.shape_cast %20 : vector<1x1x8xf32> to vector<1x8xf32>
    %c0_29 = arith.constant 0 : index
    %c0_30 = arith.constant 0 : index
    %c0_31 = arith.constant 0 : index
    %c0_32 = arith.constant 0 : index
    %22 = vector.load %arg6[%c0_29, %c0_30, %c0_31, %c0_32] : memref<1x4x8x32xbf16, #tpu.memory_space<vmem>>, vector<1x4x8x32xbf16>
    %23 = vector.shape_cast %22 : vector<1x4x8x32xbf16> to vector<4x8x32xbf16>
    %24 = arith.truncf %3 : vector<8x32xf32> to vector<8x32xbf16>
    %c0_33 = arith.constant 0 : index
    %c0_34 = arith.constant 0 : index
    %c0_35 = arith.constant 0 : index
    %25 = vector.load %arg4[%c0_33, %c0_34, %c0_35] : memref<1x32x96xbf16, #tpu.memory_space<vmem>>, vector<1x32x96xbf16>
    %26 = vector.shape_cast %25 : vector<1x32x96xbf16> to vector<32x96xbf16>
    %cst = arith.constant dense<0.000000e+00> : vector<8x96xf32>
    %27 = tpu.matmul %24, %26, %cst {dimension_numbers = #tpu.dot_dimension_numbers<[1], [0], [0], [1], [0, 0, 1, 1], [], []>} : vector<8x32xbf16>, vector<32x96xbf16>, vector<8x96xf32> -> vector<8x96xf32>
    %28 = vector.shape_cast %5 : vector<96xf32> to vector<1x96xf32>
    %29 = vector.broadcast %28 : vector<1x96xf32> to vector<8x96xf32>
    %30 = arith.addf %27, %29 : vector<8x96xf32>
    %31 = vector.extract_strided_slice %30 {offsets = [0, 0], sizes = [8, 32], strides = [1, 1]} : vector<8x96xf32> to vector<8x32xf32>
    %cst_36 = arith.constant 0.353553385 : f32
    %32 = vector.broadcast %cst_36 : f32 to vector<8x32xf32>
    %33 = arith.mulf %31, %32 : vector<8x32xf32>
    %34 = vector.extract_strided_slice %30 {offsets = [0, 32], sizes = [8, 32], strides = [1, 1]} : vector<8x96xf32> to vector<8x32xf32>
    %35 = vector.extract_strided_slice %30 {offsets = [0, 64], sizes = [8, 32], strides = [1, 1]} : vector<8x96xf32> to vector<8x32xf32>
    %36 = vector.extract_strided_slice %33 {offsets = [0, 0], sizes = [8, 8], strides = [1, 1]} : vector<8x32xf32> to vector<8x8xf32>
    %37 = vector.extract_strided_slice %33 {offsets = [0, 8], sizes = [8, 8], strides = [1, 1]} : vector<8x32xf32> to vector<8x8xf32>
    %38 = vector.extract_strided_slice %33 {offsets = [0, 16], sizes = [8, 8], strides = [1, 1]} : vector<8x32xf32> to vector<8x8xf32>
    %39 = vector.extract_strided_slice %33 {offsets = [0, 24], sizes = [8, 8], strides = [1, 1]} : vector<8x32xf32> to vector<8x8xf32>
    %40 = vector.shape_cast %36 : vector<8x8xf32> to vector<1x8x8xf32>
    %41 = vector.shape_cast %37 : vector<8x8xf32> to vector<1x8x8xf32>
    %42 = vector.shape_cast %38 : vector<8x8xf32> to vector<1x8x8xf32>
    %43 = vector.shape_cast %39 : vector<8x8xf32> to vector<1x8x8xf32>
    %44 = tpu.concatenate %40, %41, %42, %43 in 0 : vector<1x8x8xf32>, vector<1x8x8xf32>, vector<1x8x8xf32>, vector<1x8x8xf32> -> vector<4x8x8xf32>
    %45 = arith.truncf %44 : vector<4x8x8xf32> to vector<4x8x8xbf16>
    %46 = vector.extract_strided_slice %34 {offsets = [0, 0], sizes = [8, 8], strides = [1, 1]} : vector<8x32xf32> to vector<8x8xf32>
    %47 = vector.extract_strided_slice %34 {offsets = [0, 8], sizes = [8, 8], strides = [1, 1]} : vector<8x32xf32> to vector<8x8xf32>
    %48 = vector.extract_strided_slice %34 {offsets = [0, 16], sizes = [8, 8], strides = [1, 1]} : vector<8x32xf32> to vector<8x8xf32>
    %49 = vector.extract_strided_slice %34 {offsets = [0, 24], sizes = [8, 8], strides = [1, 1]} : vector<8x32xf32> to vector<8x8xf32>
    %50 = vector.shape_cast %46 : vector<8x8xf32> to vector<1x8x8xf32>
    %51 = vector.shape_cast %47 : vector<8x8xf32> to vector<1x8x8xf32>
    %52 = vector.shape_cast %48 : vector<8x8xf32> to vector<1x8x8xf32>
    %53 = vector.shape_cast %49 : vector<8x8xf32> to vector<1x8x8xf32>
    %54 = tpu.concatenate %50, %51, %52, %53 in 0 : vector<1x8x8xf32>, vector<1x8x8xf32>, vector<1x8x8xf32>, vector<1x8x8xf32> -> vector<4x8x8xf32>
    %55 = arith.truncf %54 : vector<4x8x8xf32> to vector<4x8x8xbf16>
    %56 = vector.extract_strided_slice %35 {offsets = [0, 0], sizes = [8, 8], strides = [1, 1]} : vector<8x32xf32> to vector<8x8xf32>
    %57 = vector.extract_strided_slice %35 {offsets = [0, 8], sizes = [8, 8], strides = [1, 1]} : vector<8x32xf32> to vector<8x8xf32>
    %58 = vector.extract_strided_slice %35 {offsets = [0, 16], sizes = [8, 8], strides = [1, 1]} : vector<8x32xf32> to vector<8x8xf32>
    %59 = vector.extract_strided_slice %35 {offsets = [0, 24], sizes = [8, 8], strides = [1, 1]} : vector<8x32xf32> to vector<8x8xf32>
    %60 = vector.shape_cast %56 : vector<8x8xf32> to vector<1x8x8xf32>
    %61 = vector.shape_cast %57 : vector<8x8xf32> to vector<1x8x8xf32>
    %62 = vector.shape_cast %58 : vector<8x8xf32> to vector<1x8x8xf32>
    %63 = vector.shape_cast %59 : vector<8x8xf32> to vector<1x8x8xf32>
    %64 = tpu.concatenate %60, %61, %62, %63 in 0 : vector<1x8x8xf32>, vector<1x8x8xf32>, vector<1x8x8xf32>, vector<1x8x8xf32> -> vector<4x8x8xf32>
    %65 = arith.truncf %64 : vector<4x8x8xf32> to vector<4x8x8xbf16>
    "tpu.trace_start"() <{level = 10 : i32, message = "hqd,hkd->hqk"}> : () -> ()
    %cst_37 = arith.constant dense<0.000000e+00> : vector<4x8x8xf32>
    %66 = tpu.matmul %45, %55, %cst_37 {dimension_numbers = #tpu.dot_dimension_numbers<[2], [2], [1], [1], [0, 0, 0, 1, 1, 1], [0], [0]>} : vector<4x8x8xbf16>, vector<4x8x8xbf16>, vector<4x8x8xf32> -> vector<4x8x8xf32>
    "tpu.trace_stop"() : () -> ()
    %67 = vector.shape_cast %21 : vector<1x8xf32> to vector<8xf32>
    %68 = vector.shape_cast %67 : vector<8xf32> to vector<1x1x8xf32>
    %69 = vector.broadcast %68 : vector<1x1x8xf32> to vector<4x8x8xf32>
    %70 = arith.addf %66, %69 : vector<4x8x8xf32>
    %cst_38 = arith.constant dense<0xFF800000> : vector<4x8xf32>
    %71 = vector.multi_reduction <maximumf>, %70, %cst_38 [2] : vector<4x8x8xf32> to vector<4x8xf32>
    %72 = vector.shape_cast %71 : vector<4x8xf32> to vector<4x8x1xf32>
    %73 = vector.broadcast %72 : vector<4x8x1xf32> to vector<4x8x8xf32>
    %74 = arith.subf %70, %73 : vector<4x8x8xf32>
    %75 = math.exp %74 : vector<4x8x8xf32>
    %cst_39 = arith.constant dense<0.000000e+00> : vector<4x8xf32>
    %76 = vector.multi_reduction <add>, %75, %cst_39 [2] : vector<4x8x8xf32> to vector<4x8xf32>
    %77 = vector.shape_cast %76 : vector<4x8xf32> to vector<4x8x1xf32>
    %78 = tpu.reciprocal %77 {approx = true} : vector<4x8x1xf32> -> vector<4x8x1xf32>
    %79 = vector.broadcast %78 : vector<4x8x1xf32> to vector<4x8x8xf32>
    %80 = arith.mulf %75, %79 : vector<4x8x8xf32>
    %81 = arith.truncf %80 : vector<4x8x8xf32> to vector<4x8x8xbf16>
    "tpu.trace_start"() <{level = 10 : i32, message = "hqk,hkd->hqd"}> : () -> ()
    %cst_40 = arith.constant dense<0.000000e+00> : vector<4x8x8xf32>
    %82 = tpu.matmul %81, %65, %cst_40 {dimension_numbers = #tpu.dot_dimension_numbers<[2], [1], [1], [2], [0, 0, 0, 1, 1, 2], [0], [0]>} : vector<4x8x8xbf16>, vector<4x8x8xbf16>, vector<4x8x8xf32> -> vector<4x8x8xf32>
    "tpu.trace_stop"() : () -> ()
    %83 = arith.truncf %82 : vector<4x8x8xf32> to vector<4x8x8xbf16>
    "tpu.trace_start"() <{level = 10 : i32, message = "hqd,hde->hqe"}> : () -> ()
    %cst_41 = arith.constant dense<0.000000e+00> : vector<4x8x32xf32>
    %84 = tpu.matmul %83, %23, %cst_41 {dimension_numbers = #tpu.dot_dimension_numbers<[2], [1], [1], [2], [0, 0, 0, 1, 1, 2], [0], [0]>} : vector<4x8x8xbf16>, vector<4x8x32xbf16>, vector<4x8x32xf32> -> vector<4x8x32xf32>
    "tpu.trace_stop"() : () -> ()
    %cst_42 = arith.constant dense<0.000000e+00> : vector<8x32xf32>
    %85 = vector.multi_reduction <add>, %84, %cst_42 [0] : vector<4x8x32xf32> to vector<8x32xf32>
    %86 = vector.shape_cast %7 : vector<32xf32> to vector<1x32xf32>
    %87 = vector.broadcast %86 : vector<1x32xf32> to vector<8x32xf32>
    %88 = arith.addf %85, %87 : vector<8x32xf32>
    %89 = arith.addf %3, %88 : vector<8x32xf32>
    %cst_43 = arith.constant dense<0.000000e+00> : vector<8xf32>
    %90 = vector.multi_reduction <add>, %89, %cst_43 [1] : vector<8x32xf32> to vector<8xf32>
    %91 = vector.shape_cast %90 : vector<8xf32> to vector<8x1xf32>
    %cst_44 = arith.constant 3.200000e+01 : f32
    %92 = vector.broadcast %cst_44 : f32 to vector<8x1xf32>
    %93 = arith.divf %91, %92 : vector<8x1xf32>
    %94 = vector.broadcast %93 : vector<8x1xf32> to vector<8x32xf32>
    %95 = arith.subf %89, %94 : vector<8x32xf32>
    %96 = arith.mulf %95, %95 : vector<8x32xf32>
    %cst_45 = arith.constant dense<0.000000e+00> : vector<8xf32>
    %97 = vector.multi_reduction <add>, %96, %cst_45 [1] : vector<8x32xf32> to vector<8xf32>
    %98 = vector.shape_cast %97 : vector<8xf32> to vector<8x1xf32>
    %cst_46 = arith.constant 3.200000e+01 : f32
    %99 = vector.broadcast %cst_46 : f32 to vector<8x1xf32>
    %100 = arith.divf %98, %99 : vector<8x1xf32>
    %101 = vector.broadcast %93 : vector<8x1xf32> to vector<8x32xf32>
    %102 = arith.subf %89, %101 : vector<8x32xf32>
    %cst_47 = arith.constant 9.99999974E-6 : f32
    %103 = vector.broadcast %cst_47 : f32 to vector<8x1xf32>
    %104 = arith.addf %100, %103 : vector<8x1xf32>
    %105 = math.rsqrt %104 : vector<8x1xf32>
    %106 = vector.broadcast %105 : vector<8x1xf32> to vector<8x32xf32>
    %107 = arith.mulf %102, %106 : vector<8x32xf32>
    %108 = vector.shape_cast %9 : vector<32xf32> to vector<1x32xf32>
    %109 = vector.broadcast %108 : vector<1x32xf32> to vector<8x32xf32>
    %110 = arith.mulf %107, %109 : vector<8x32xf32>
    %111 = vector.shape_cast %11 : vector<32xf32> to vector<1x32xf32>
    %112 = vector.broadcast %111 : vector<1x32xf32> to vector<8x32xf32>
    %113 = arith.addf %110, %112 : vector<8x32xf32>
    %114 = arith.truncf %113 : vector<8x32xf32> to vector<8x32xbf16>
    %c0_48 = arith.constant 0 : index
    %c0_49 = arith.constant 0 : index
    %c0_50 = arith.constant 0 : index
    %115 = vector.load %arg10[%c0_48, %c0_49, %c0_50] : memref<1x32x2048xbf16, #tpu.memory_space<vmem>>, vector<1x32x2048xbf16>
    %116 = vector.shape_cast %115 : vector<1x32x2048xbf16> to vector<32x2048xbf16>
    %cst_51 = arith.constant dense<0.000000e+00> : vector<8x2048xf32>
    %117 = tpu.matmul %114, %116, %cst_51 {dimension_numbers = #tpu.dot_dimension_numbers<[1], [0], [0], [1], [0, 0, 1, 1], [], []>} : vector<8x32xbf16>, vector<32x2048xbf16>, vector<8x2048xf32> -> vector<8x2048xf32>
    %118 = vector.shape_cast %13 : vector<2048xf32> to vector<1x2048xf32>
    %119 = vector.broadcast %118 : vector<1x2048xf32> to vector<8x2048xf32>
    %120 = arith.addf %117, %119 : vector<8x2048xf32>
    %cst_52 = arith.constant 0.000000e+00 : f32
    %121 = vector.broadcast %cst_52 : f32 to vector<8x2048xf32>
    %122 = arith.maximumf %120, %121 : vector<8x2048xf32>
    %123 = arith.truncf %122 : vector<8x2048xf32> to vector<8x2048xbf16>
    %c0_53 = arith.constant 0 : index
    %c0_54 = arith.constant 0 : index
    %c0_55 = arith.constant 0 : index
    %124 = vector.load %arg12[%c0_53, %c0_54, %c0_55] : memref<1x2048x32xbf16, #tpu.memory_space<vmem>>, vector<1x2048x32xbf16>
    %125 = vector.shape_cast %124 : vector<1x2048x32xbf16> to vector<2048x32xbf16>
    %cst_56 = arith.constant dense<0.000000e+00> : vector<8x32xf32>
    %126 = tpu.matmul %123, %125, %cst_56 {dimension_numbers = #tpu.dot_dimension_numbers<[1], [0], [0], [1], [0, 0, 1, 1], [], []>} : vector<8x2048xbf16>, vector<2048x32xbf16>, vector<8x32xf32> -> vector<8x32xf32>
    %127 = vector.shape_cast %15 : vector<32xf32> to vector<1x32xf32>
    %128 = vector.broadcast %127 : vector<1x32xf32> to vector<8x32xf32>
    %129 = arith.addf %126, %128 : vector<8x32xf32>
    %130 = arith.addf %113, %129 : vector<8x32xf32>
    %cst_57 = arith.constant dense<0.000000e+00> : vector<8xf32>
    %131 = vector.multi_reduction <add>, %130, %cst_57 [1] : vector<8x32xf32> to vector<8xf32>
    %132 = vector.shape_cast %131 : vector<8xf32> to vector<8x1xf32>
    %cst_58 = arith.constant 3.200000e+01 : f32
    %133 = vector.broadcast %cst_58 : f32 to vector<8x1xf32>
    %134 = arith.divf %132, %133 : vector<8x1xf32>
    %135 = vector.broadcast %134 : vector<8x1xf32> to vector<8x32xf32>
    %136 = arith.subf %130, %135 : vector<8x32xf32>
    %137 = arith.mulf %136, %136 : vector<8x32xf32>
    %cst_59 = arith.constant dense<0.000000e+00> : vector<8xf32>
    %138 = vector.multi_reduction <add>, %137, %cst_59 [1] : vector<8x32xf32> to vector<8xf32>
    %139 = vector.shape_cast %138 : vector<8xf32> to vector<8x1xf32>
    %cst_60 = arith.constant 3.200000e+01 : f32
    %140 = vector.broadcast %cst_60 : f32 to vector<8x1xf32>
    %141 = arith.divf %139, %140 : vector<8x1xf32>
    %142 = vector.broadcast %134 : vector<8x1xf32> to vector<8x32xf32>
    %143 = arith.subf %130, %142 : vector<8x32xf32>
    %cst_61 = arith.constant 9.99999974E-6 : f32
    %144 = vector.broadcast %cst_61 : f32 to vector<8x1xf32>
    %145 = arith.addf %141, %144 : vector<8x1xf32>
    %146 = math.rsqrt %145 : vector<8x1xf32>
    %147 = vector.broadcast %146 : vector<8x1xf32> to vector<8x32xf32>
    %148 = arith.mulf %143, %147 : vector<8x32xf32>
    %149 = vector.shape_cast %17 : vector<32xf32> to vector<1x32xf32>
    %150 = vector.broadcast %149 : vector<1x32xf32> to vector<8x32xf32>
    %151 = arith.mulf %148, %150 : vector<8x32xf32>
    %152 = vector.shape_cast %19 : vector<32xf32> to vector<1x32xf32>
    %153 = vector.broadcast %152 : vector<1x32xf32> to vector<8x32xf32>
    %154 = arith.addf %151, %153 : vector<8x32xf32>
    %c3_i32 = arith.constant 3 : i32
    %155 = arith.cmpi slt, %arg1, %c3_i32 : i32
    %156 = arith.extui %155 : i1 to i32
    %c0_i32_62 = arith.constant 0 : i32
    %157 = arith.cmpi ne, %156, %c0_i32_62 : i32
    scf.if %157 {
      %c0_65 = arith.constant 0 : index
      %c0_66 = arith.constant 0 : index
      %161 = vector.load %arg17[%c0_65, %c0_66] : memref<8x32xf32, #tpu.memory_space<vmem>>, vector<8x32xf32>
      tpu.vector_store %arg17[%c0_65, %c0_66], %154 {strides = array<i32>} : memref<8x32xf32, #tpu.memory_space<vmem>>, vector<8x32xf32>,
    } else {
    }
    %c3_i32_63 = arith.constant 3 : i32
    %158 = arith.cmpi eq, %arg1, %c3_i32_63 : i32
    %159 = arith.extui %158 : i1 to i32
    %c0_i32_64 = arith.constant 0 : i32
    %160 = arith.cmpi ne, %159, %c0_i32_64 : i32
    scf.if %160 {
      %c0_65 = arith.constant 0 : index
      %c0_66 = arith.constant 0 : index
      %c0_67 = arith.constant 0 : index
      %161 = vector.load %arg16[%c0_65, %c0_66, %c0_67] : memref<1x8x32xf32, #tpu.memory_space<vmem>>, vector<1x8x32xf32>
      %162 = vector.shape_cast %161 : vector<1x8x32xf32> to vector<8x32xf32>
      %163 = vector.shape_cast %154 : vector<8x32xf32> to vector<1x8x32xf32>
      tpu.vector_store %arg16[%c0_65, %c0_66, %c0_67], %163 {strides = array<i32>} : memref<1x8x32xf32, #tpu.memory_space<vmem>>, vector<1x8x32xf32>,
    } else {
    }
    return
  }
  func.func @transform_0(%arg0: i32, %arg1: i32) -> (i32, i32, i32) {
    %c0_i32 = arith.constant 0 : i32
    %c0_i32_0 = arith.constant 0 : i32
    %c0_i32_1 = arith.constant 0 : i32
    return %arg0, %c0_i32, %c0_i32_0 : i32, i32, i32
  }
  func.func @transform_1(%arg0: i32, %arg1: i32) -> (i32, i32, i32) {
    %c0_i32 = arith.constant 0 : i32
    %c0_i32_0 = arith.constant 0 : i32
    %c0_i32_1 = arith.constant 0 : i32
    return %arg0, %c0_i32, %c0_i32_0 : i32, i32, i32
  }
  func.func @transform_2(%arg0: i32, %arg1: i32) -> (i32, i32, i32) {
    %c0_i32 = arith.constant 0 : i32
    %c0_i32_0 = arith.constant 0 : i32
    %c0_i32_1 = arith.constant 0 : i32
    return %arg1, %c0_i32, %c0_i32_0 : i32, i32, i32
  }
  func.func @transform_3(%arg0: i32, %arg1: i32) -> (i32, i32, i32) {
    %c0_i32 = arith.constant 0 : i32
    %c0_i32_0 = arith.constant 0 : i32
    %c0_i32_1 = arith.constant 0 : i32
    return %arg1, %c0_i32, %c0_i32_0 : i32, i32, i32
  }
  func.func @transform_4(%arg0: i32, %arg1: i32) -> (i32, i32, i32, i32) {
    %c0_i32 = arith.constant 0 : i32
    %c0_i32_0 = arith.constant 0 : i32
    %c0_i32_1 = arith.constant 0 : i32
    %c0_i32_2 = arith.constant 0 : i32
    return %arg1, %c0_i32, %c0_i32_0, %c0_i32_1 : i32, i32, i32, i32
  }
  func.func @transform_5(%arg0: i32, %arg1: i32) -> (i32, i32, i32) {
    %c0_i32 = arith.constant 0 : i32
    %c0_i32_0 = arith.constant 0 : i32
    %c0_i32_1 = arith.constant 0 : i32
    return %arg1, %c0_i32, %c0_i32_0 : i32, i32, i32
  }
  func.func @transform_6(%arg0: i32, %arg1: i32) -> (i32, i32, i32) {
    %c0_i32 = arith.constant 0 : i32
    %c0_i32_0 = arith.constant 0 : i32
    %c0_i32_1 = arith.constant 0 : i32
    return %arg1, %c0_i32, %c0_i32_0 : i32, i32, i32
  }
  func.func @transform_7(%arg0: i32, %arg1: i32) -> (i32, i32, i32) {
    %c0_i32 = arith.constant 0 : i32
    %c0_i32_0 = arith.constant 0 : i32
    %c0_i32_1 = arith.constant 0 : i32
    return %arg1, %c0_i32, %c0_i32_0 : i32, i32, i32
  }
  func.func @transform_8(%arg0: i32, %arg1: i32) -> (i32, i32, i32) {
    %c0_i32 = arith.constant 0 : i32
    %c0_i32_0 = arith.constant 0 : i32
    %c0_i32_1 = arith.constant 0 : i32
    return %arg1, %c0_i32, %c0_i32_0 : i32, i32, i32
  }
  func.func @transform_9(%arg0: i32, %arg1: i32) -> (i32, i32, i32) {
    %c0_i32 = arith.constant 0 : i32
    %c0_i32_0 = arith.constant 0 : i32
    %c0_i32_1 = arith.constant 0 : i32
    return %arg1, %c0_i32, %c0_i32_0 : i32, i32, i32
  }
  func.func @transform_10(%arg0: i32, %arg1: i32) -> (i32, i32, i32) {
    %c0_i32 = arith.constant 0 : i32
    %c0_i32_0 = arith.constant 0 : i32
    %c0_i32_1 = arith.constant 0 : i32
    return %arg1, %c0_i32, %c0_i32_0 : i32, i32, i32
  }
  func.func @transform_11(%arg0: i32, %arg1: i32) -> (i32, i32, i32) {
    %c0_i32 = arith.constant 0 : i32
    %c0_i32_0 = arith.constant 0 : i32
    %c0_i32_1 = arith.constant 0 : i32
    return %arg1, %c0_i32, %c0_i32_0 : i32, i32, i32
  }
  func.func @transform_12(%arg0: i32, %arg1: i32) -> (i32, i32, i32) {
    %c0_i32 = arith.constant 0 : i32
    %c0_i32_0 = arith.constant 0 : i32
    %c0_i32_1 = arith.constant 0 : i32
    return %arg1, %c0_i32, %c0_i32_0 : i32, i32, i32
  }
  func.func @transform_13(%arg0: i32, %arg1: i32) -> (i32, i32, i32) {
    %c0_i32 = arith.constant 0 : i32
    %c0_i32_0 = arith.constant 0 : i32
    %c0_i32_1 = arith.constant 0 : i32
    return %arg1, %c0_i32, %c0_i32_0 : i32, i32, i32
  }
  func.func @transform_14(%arg0: i32, %arg1: i32) -> (i32, i32, i32) {
    %c0_i32 = arith.constant 0 : i32
    %c0_i32_0 = arith.constant 0 : i32
    %c0_i32_1 = arith.constant 0 : i32
    return %arg0, %c0_i32, %c0_i32_0 : i32, i32, i32
  }
}

</mosaic_0001>

<bundles_post_ra>
// kernel: tpu_custom_call.1
= control target key start
LH: loop header
LB: loop body
LE: loop exit
PB: predicated region body
PF: predicated region fallthrough
CT: control target
= control target key end

     0   :  { %s5257_s0 = inlined_call_operand.vmem [shape: bf16[2,8,32], index: 0, kind: input, shape index: {}]   ;;  %s5258_s1 = inlined_call_operand.vmem [shape: f32[2,1,8], index: 1, kind: input, shape index: {}]   ;;  %s5259_s2 = inlined_call_operand.vmem [shape: bf16[4,32,96], index: 2, kind: input, shape index: {}]   ;;  %s5260_s3 = inlined_call_operand.vmem [shape: f32[4,1,96], index: 3, kind: input, shape index: {}]   ;;  %s5261_s4 = inlined_call_operand.vmem [shape: bf16[4,4,8,32], index: 4, kind: input, shape index: {}]   ;;  %s5262_s5 = inlined_call_operand.vmem [shape: f32[4,1,32], index: 5, kind: input, shape index: {}]   ;;  %s5263_s6 = inlined_call_operand.vmem [shape: f32[4,1,32], index: 6, kind: input, shape index: {}]   ;;  %s5264_s7 = inlined_call_operand.vmem [shape: f32[4,1,32], index: 7, kind: input, shape index: {}]   ;;  %s5265_s8 = inlined_call_operand.vmem [shape: bf16[4,32,2048], index: 8, kind: input, shape index: {}]   ;;  %s5266_s9 = inlined_call_operand.vmem [shape: f32[4,1,2048], index: 9, kind: input, shape index: {}]   ;;  %s5267_s10 = inlined_call_operand.vmem [shape: bf16[4,2048,32], index: 10, kind: input, shape index: {}]   ;;  %s5268_s11 = inlined_call_operand.vmem [shape: f32[4,1,32], index: 11, kind: input, shape index: {}]   ;;  %s5269_s12 = inlined_call_operand.vmem [shape: f32[4,1,32], index: 12, kind: input, shape index: {}]   ;;  %s5270_s13 = inlined_call_operand.vmem [shape: f32[4,1,32], index: 13, kind: input, shape index: {}]   ;;  %s5271_s14 = inlined_call_operand.hbm [shape: f32[2,8,32], index: 14, kind: output, shape index: {}]  }
   0x1   :  { %5288 = sst [smem:[#allocation20_spill]] %s5257_s0 }
   0x2   :  { %5289 = sst [smem:[#allocation21_spill]] %s5258_s1 }
   0x3   :  { %5290 = sst [smem:[#allocation22_spill]] %s5259_s2 }
   0x4   :  { %5291 = sst [smem:[#allocation23_spill]] %s5261_s4 }
   0x5   :  { %5292 = sst [smem:[#allocation24_spill]] %s5266_s9 }
   0x6   :  { %5293 = sst [smem:[#allocation25_spill]] %s5269_s12 }
   0x7   :  { %5294 = sst [smem:[#allocation26_spill]] %s5270_s13 }
   0x8   :  { %5295 = sst [smem:[#allocation27_spill]] %s5271_s14 }
   0x9   :  { %19 = vsyncpa [#allocation4], 0 }
   0xa   :  { %21 = vsyncpa [#allocation4 + $0x1], 0  ;;  %s4629_s29 = smov 0   ;;  %s4631_s30 = smov 0  }
   0xb   :  { %s4633_s15 = smov 0   ;;  %s4635_s16 = smov 0  }
   0xc   :  { %s4637_s17 = smov 0   ;;  %s4639_s18 = smov 0  }
   0xd   :  { %s4641_s19 = smov 0   ;;  %s4643_s20 = smov 0  }
   0xe LB: > { %5296 = sst [smem:[#allocation6_spill]] %s4515_s29  ;;  %s3721_s21 = sadd.s32 4294967295, %s4543_s20   ;;  %s4543_s20 = sphi %s4643_s20, %s27_s20   ;;  %s4539_s19 = sphi %s4641_s19, %s5345_s19   ;;  %s4535_s18 = sphi %s4639_s18, %s5344_s18   ;;  %s4531_s17 = sphi %s4637_s17, %s5343_s17   ;;  %s4527_s16 = sphi %s4635_s16, %s5342_s16   ;;  %s4523_s15 = sphi %s4633_s15, %s5341_s15   ;;  %s4519_s30 = sphi %s4631_s30, %s5340_s30   ;;  %s4515_s29 = sphi %s4629_s29, %s5339_s29  }
   0xf   : > { %5297 = sst [smem:[#allocation7_spill]] %s4519_s30  ;;  %s3722_s22 = sadd.s32 4294967294, %s4543_s20  }
  0x10   : > { %5298 = sst [smem:[#allocation8_spill]] %s4523_s15  ;;  %s36_s23 = sadd.s32 1, %s4535_s18 }
  0x11   : > { %5299 = sst [smem:[#allocation9_spill]] %s4527_s16  ;;  %p37_p0 = scmp.ge.s32.totalorder %s36_s23, 4 }
  0x12   : > { %5300 = sst [smem:[#allocation10_spill]] %s4531_s17  ;;  %s39_s24 = sadd.s32 1, %s4539_s19 }
  0x13   : > { %5301 = sst [smem:[#allocation11_spill]] %s4535_s18  ;;  %p420_p1 = scmp.ne.s32.totalorder %s4523_s15, %s4519_s30 }
  0x14   : > { %5302 = sst [smem:[#allocation12_spill]] %s4539_s19  ;;  %p421_p2 = scmp.eq.s32.totalorder %s3721_s21, 7 }
  0x15   : > { %5303 = sst [smem:[#allocation13_spill]] %s4543_s20  ;;  %s5347_s23 = smov (%p37_p0, %s36_s23), 0 }
  0x16   : > { %5304 = sst [smem:[#allocation14_spill]] %s5347_s23  ;;  %s5349_s24 = smov (!%p37_p0, %s39_s24), %s4539_s19 }
  0x17   : > { %p4678_p3 = por %p421_p2, %p420_p1  ;;  %p426_p4 = scmp.ne.s32.totalorder %s4519_s30, %s4515_s29 }
  0x18   : > { %p41_p5 = scmp.ge.s32.totalorder %s5349_s24, 2  ;;  %p427_p6 = scmp.eq.s32.totalorder %s3722_s22, 7 }
  0x19   : > { %s5305_s25 = scalar_select %p4678_p3, 1, 0 }
  0x1a   : > { %p3725_p7 = scmp.ge.s32.totalorder %s4543_s20, 1  ;;  %p539_p8 = scmp.lt.s32.totalorder %s4543_s20, 9 }
  0x1b   : > { %5306 = sst [smem:[#allocation15_spill]] %s5305_s25  ;;  %s5351_s24 = smov (%p41_p5, %s5349_s24), 0 }
  0x1c   : > { %5307 = sst [smem:[#allocation16_spill]] %s5351_s24  ;;  %p4688_p9 = por %p427_p6, %p426_p4 }
  0x1d   : > { %p540_p10 = pnand %p3725_p7, %p539_p8  ;;  %s407_s27 = ssub.s32 %s4539_s19, %s5351_s24 }
  0x1e   : > { %s5308_s26 = scalar_select %p4688_p9, 1, 0 }
  0x1f   : > { %s410_s28 = sadd.s32 1, %s4523_s15  ;;  %p408_p11 = scmp.eq.s32.totalorder %s407_s27, 0 }
  0x20   : > { %5309 = sst [smem:[#allocation17_spill]] %s5308_s26  ;;  %543 = sbr.rel (%p540_p10) target bundleno = 2578 (0xa12), region = 76 }
  0x21   : > { %s4696_s21 = scalar_select %p408_p11, %s4523_s15, %s410_s28  }
  0x23   : > { %5310 = sst [smem:[#allocation18_spill]] %s4696_s21 }
  0x25   : > { %s5275_s22 = sand.u32 1, %s4519_s30   ;;  %p632_p12 = scmp.lt.s32.totalorder %s4531_s17, 1 }
  0x26   : > { %s4702_s23 = sshll.u32 %s5275_s22, 3  ;;  %p639_p13 = scmp.lt.s32.totalorder %s4527_s16, 3 }
  0x27   : > { %s4706_s18 = scalar_select %p632_p12, %s4531_s17, 1 }
  0x28   : > { %s4709_s27 = scalar_select %p639_p13, %s4527_s16, 3 }
  0x29   : > { %s3727_s28 = sshll.u32 %s4706_s18, 2  ;;  %s5312_s0 = sld [smem:[#allocation20_spill]] }
  0x2a   : > { %s3935_s29 = sshll.u32 %s4709_s27, 4  ;;  %s5313_s2 = sld [smem:[#allocation22_spill]] }
  0x2b   : > { %s5314_s4 = sld [smem:[#allocation23_spill]]  ;;  %s3938_s22 = sshll.u32 %s4709_s27, 10 }
  0x2c   : > { %s5315_s9 = sld [smem:[#allocation24_spill]]  ;;  %s4759_s21 = scalar_lea.vmem %s5267_s10, %s3938_s22 }
  0x2d   : > { %s677_s14 = scalar_lea.vmem %s5268_s11, %s4709_s27  ;;  %s5317_s30 = sld [smem:[#allocation25_spill]] }
  0x2e   : > { %s5319_s13 = sld [smem:[#allocation9_spill]] }
  0x2f   : > { %s635_s26 = scalar_lea.vmem %s5312_s0, %s3727_s28 }
  0x30   : > { %s643_s25 = scalar_lea.vmem %s5313_s2, %s3935_s29  ;;  %s3937_s2 = sshll.u32 %s4709_s27, 8 }
  0x31   : > { %s4730_s19 = scalar_lea.vmem %s5314_s4, %s3935_s29  ;;  %s4753_s4 = scalar_lea.vmem %s5265_s8, %s3937_s2 }
  0x32   : > { %s4748_s16 = scalar_lea.vmem %s5315_s9, %s3935_s29  ;;  %s631_s2 = scalar_lea.vmem [#allocation3], %s4702_s23 }
  0x33   : > { %5316 = sst [smem:[#allocation19_spill]] %s4748_s16  ;;  %s680_s29 = scalar_lea.vmem %s5317_s30, %s4709_s27 }
  0x34   : > { %s5318_s16 = sld [smem:[#allocation26_spill]]  ;;  %p3737_p0 = scmp.ne.s32.totalorder %s5319_s13, 0 }
  0x36   : > { %688 = sbr.rel (%p3737_p0) target bundleno = 63 (0x3f), region = 80 }
  0x3a   : > { %s683_s12 = scalar_lea.vmem %s5318_s16, %s4709_s27 }
  0x3b   : > { %v689_v0 = vld [vmem:[%s635_s26] sm:$0xf]  ;;  %vm691_vm0 = vcmask 261120  }
  0x3c   : > { %v690_v1 = vunpack.c.l.bf16 %v689_v0 }
  0x3e   : > { %692 = vst.msk [vmem:[#allocation2] sm:$0xff] %vm691_vm0, %v690_v1 }
  0x3f PF: > { %v4301_v2 = vld [vmem:[%s643_s25 + $0x8] sm:$0xff]   ;;  %v4545_v3 = vmov 0.0   ;;  %v4302_v4 = vld [vmem:[%s643_s25] sm:$0xff]   ;;  %vm4546_vm1 = vmmov 0   ;;  %vm731_vm2 = vcmask 261120   ;;  %s5320_s16 = scalar_lea.vmem %s5260_s3, %s4709_s27  ;;  %s4547_s25 = smov 104  }
  0x40   : > { %4142 = vmatprep.subr.bf16.mxu0 %v4545_v3  ;;  %4150 = vmatprep.subr.bf16.mxu1 %v4545_v3  ;;  %v3738_v7 = vld [vmem:[%s5320_s16] ss:$0 sm:$0xff]  ;;  %s4548_s26 = smov 120   ;;  %s4549_s15 = smov 112   ;;  %vm813_vm3 = vcmask 64512   ;;  %vm1060_vm4 = vcmask 1043456  }
  0x41   : > { %4143 = vmatpush3.bf16.msra.mxu0 %v4301_v2  ;;  %4146 = vmatprep.mubr.msk.bf16.mxu0 %vm4546_vm1, %v4545_v3  ;;  %s4550_s20 = smov 96   ;;  %s5321_s28 = sld [smem:[#allocation21_spill]] }
  0x42   : > { %4144 = vmatprep.subr.bf16.mxu0 %v4545_v3  ;;  %4152 = vmatprep.mubr.msk.bf16.mxu1 %vm4546_vm1, %v4545_v3  ;;  %s5323_s17 = scalar_lea.vmem %s5262_s5, %s4709_s27  ;;  %s5324_s9 = scalar_lea.vmem %s5263_s6, %s4709_s27 }
  0x45   : > { %v4779_v5 = vld [vmem:[#allocation2] sm:$0xff]  ;;  %4145 = vmatpush3.bf16.msra.mxu0 %v4302_v4 }
  0x46   : > { %v708_v6 = vpack.c.bf16 %v4779_v5, %v4779_v5  ;;  %4156 = vmatprep.subr.bf16.mxu0 %v4545_v3 }
  0x47   : > { %s5322_s1 = scalar_lea.vmem %s5321_s28, %s4706_s18  ;;  %s4551_s18 = smov 64  }
  0x48   : > { %4147 = vmatmul.mubr.msk.bf16.vlgmr.msra.gmra.mxu0 %vm731_vm2, %v708_v6  ;;  %v3742_v36 = vld [vmem:[%s5322_s1] ss:$0 sm:$0xff] }
  0x49   : > { %4158 = vmatprep.mubr.msk.bf16.mxu0 %vm4546_vm1, %v4545_v3 }
 0x108   : > { %v769_v8 = vpop.f32.mrf.mxu0 }
 0x109   : > { %v770_v9 = vadd.f32 %v3738_v7, %v769_v8 }
 0x10a   : > { %v4148_v10 = vpop.f32.mrf.mxu0 }
 0x10b   : > { %797 = vrot.lane.b32.xlu1 %v770_v9, %s4547_s25  ;;  %791 = vrot.lane.b32.xlu0 %v770_v9, %s4548_s26  ;;  %v4795_v12 = vpack.c.bf16 %v770_v9, %v770_v9  ;;  %v775_v14 = vmul.f32 0.35355338, %v770_v9 }
 0x10c   : > { %v772_v11 = vpop.f32.mrf.mxu0 }
 0x10d   : > { %v786_v23 = vpack.c.bf16 %v775_v14, %v775_v14 }
 0x10e   : > { %v4149_v13 = vpop.f32.mrf.mxu0 }
 0x10f   : > { %794 = vrot.lane.b32.xlu0 %v770_v9, %s4549_s15  ;;  %811 = vrot.lane.b32.xlu1 %v4795_v12, %s4550_s20 }
 0x113   : > { %777 = vrot.lane.b32.xlu1 %v775_v14, %s4548_s26  ;;  %s5325_s26 = scalar_lea.vmem %s5264_s7, %s4709_s27 }
 0x17d   : > { %v798_v15 = vpop.permute.xlu1 %797  ;;  %v792_v16 = vpop.permute.xlu0 %791 }
 0x17e   : > { %v4798_v17 = vpack.c.bf16 %v798_v15, %v798_v15  ;;  %v4800_v18 = vpack.c.bf16 %v792_v16, %v792_v16 }
 0x180   : > { %861 = vrot.lane.b32.xlu0 %v4800_v18, %s4550_s20  ;;  %959 = vrot.lane.b32.xlu1 %v4798_v17, %s4550_s20 }
 0x181   : > { %v795_v19 = vpop.permute.xlu0 %794  ;;  %v812_v20 = vpop.permute.xlu1 %811 }
 0x182   : > { %v4804_v21 = vpack.c.bf16 %v795_v19, %v795_v19  ;;  %v818_v22 = vsel %vm813_vm3, %v812_v20, 0 }
 0x183   : > { %4151 = vmatpush3.bf16.xpose.msra.mxu1 %v818_v22 }
 0x184   : > { %910 = vrot.lane.b32.xlu0 %v4804_v21, %s4550_s20  ;;  %783 = vrot.lane.b32.xlu1 %v775_v14, %s4547_s25 }
 0x185   : > { %4162 = vmatprep.subr.bf16.mxu1 %v4545_v3  ;;  %v778_v26 = vpop.permute.xlu1 %777 }
 0x186   : > { %v787_v30 = vpack.c.bf16 %v778_v26, %v778_v26 }
 0x188   : > { %780 = vrot.lane.b32.xlu0 %v775_v14, %s4549_s15 }
 0x18a   : > { %4153 = vmatmul.mubr.msk.bf16.vlgmr.msra.gmra.mxu1 %vm813_vm3, %v786_v23 }
 0x18b   : > { %4164 = vmatprep.mubr.msk.bf16.mxu1 %vm4546_vm1, %v4545_v3 }
 0x1f2   : > { %v862_v24 = vpop.permute.xlu0 %861  ;;  %v960_v29 = vpop.permute.xlu1 %959 }
 0x1f3   : > { %v867_v25 = vsel %vm813_vm3, %v862_v24, 0  ;;  %v965_v32 = vsel %vm813_vm3, %v960_v29, 0 }
 0x1f4   : > { %4157 = vmatpush3.bf16.xpose.msra.mxu0 %v867_v25 }
 0x1f5   : > { %4168 = vmatprep.subr.bf16.mxu0 %v4545_v3 }
 0x1f6   : > { %v911_v27 = vpop.permute.xlu0 %910  ;;  %v784_v34 = vpop.permute.xlu1 %783 }
 0x1f7   : > { %v916_v28 = vsel %vm813_vm3, %v911_v27, 0  ;;  %v789_v35 = vpack.c.bf16 %v784_v34, %v784_v34 }
 0x1f8   : > { %4163 = vmatpush3.bf16.xpose.msra.mxu1 %v916_v28 }
 0x1f9   : > { %4174 = vmatprep.subr.bf16.mxu1 %v4545_v3 }
 0x1fa   : > { %v781_v31 = vpop.permute.xlu0 %780 }
 0x1fb   : > { %4159 = vmatmul.mubr.msk.bf16.vlgmr.msra.gmra.mxu0 %vm813_vm3, %v787_v30  ;;  %v788_v33 = vpack.c.bf16 %v781_v31, %v781_v31 }
 0x1fc   : > { %4169 = vmatpush3.bf16.xpose.msra.mxu0 %v965_v32  ;;  %4170 = vmatprep.mubr.msk.bf16.mxu0 %vm4546_vm1, %v4545_v3 }
 0x1fd   : > { %4180 = vmatprep.subr.bf16.mxu0 %v4545_v3 }
 0x1ff   : > { %4165 = vmatmul.mubr.msk.bf16.vlgmr.msra.gmra.mxu1 %vm813_vm3, %v788_v33 }
 0x200   : > { %4176 = vmatprep.mubr.msk.bf16.mxu1 %vm4546_vm1, %v4545_v3 }
 0x203   : > { %4171 = vmatmul.mubr.msk.bf16.vlgmr.msra.gmra.mxu0 %vm813_vm3, %v789_v35 }
 0x204   : > { %4182 = vmatprep.mubr.msk.bf16.mxu0 %vm4546_vm1, %v4545_v3 }
 0x24a   : > { %v854_v37 = vpop.f32.mrf.mxu1 }
 0x24b   : > { %v855_v38 = vadd.f32 %v3742_v36, %v854_v37  ;;  %v704_v37 = vld [vmem:[%s4730_s19] sm:$0xf] }
 0x24c   : > { %v4154_v39 = vpop.f32.mrf.mxu1 }
 0x24d   : > { %v1007_v40 = vsel %vm813_vm3, %v855_v38, -inf }
 0x24e   : > { %1008 = vmax.xlane.f32.xlu0 %v1007_v40  ;;  %v857_v41 = vpop.f32.mrf.mxu1 }
 0x24f   : > { %v1256_v41 = vsel %vm1060_vm4, %v704_v37, 0 }
 0x250   : > { %v4155_v42 = vpop.f32.mrf.mxu1 }
 0x2bb   : > { %v903_v43 = vpop.f32.mrf.mxu0 }
 0x2bc   : > { %v904_v44 = vadd.f32 %v3742_v36, %v903_v43  ;;  %v705_v43 = vld [vmem:[%s4730_s19 + $0x4] sm:$0xf] }
 0x2bd   : > { %v4160_v45 = vpop.f32.mrf.mxu0 }
 0x2be   : > { %v1010_v46 = vsel %vm813_vm3, %v904_v44, -inf }
 0x2bf   : > { %v952_v47 = vpop.f32.mrf.mxu1  ;;  %1011 = vmax.xlane.f32.xlu1 %v1010_v46  ;;  %v906_v48 = vpop.f32.mrf.mxu0  ;;  %v1302_v46 = vsel %vm1060_vm4, %v705_v43, 0 }
 0x2c0   : > { %v953_v49 = vadd.f32 %v3742_v36, %v952_v47  ;;  %v706_v47 = vld [vmem:[%s4730_s19 + $0x8] sm:$0xf] }
 0x2c1   : > { %v4161_v50 = vpop.f32.mrf.mxu0  ;;  %v4166_v51 = vpop.f32.mrf.mxu1 }
 0x2c2   : > { %v1013_v52 = vsel %vm813_vm3, %v953_v49, -inf  ;;  %v1348_v50 = vsel %vm1060_vm4, %v706_v47, 0  ;;  %v1480_v47 = vld [vmem:[%s4753_s4] sm:$0xff] }
 0x2c3   : > { %1014 = vmax.xlane.f32.xlu0 %v1013_v52  ;;  %v955_v53 = vpop.f32.mrf.mxu1  ;;  %v1001_v54 = vpop.f32.mrf.mxu0 }
 0x2c4   : > { %v1002_v55 = vadd.f32 %v3742_v36, %v1001_v54  ;;  %v707_v54 = vld [vmem:[%s4730_s19 + $0xc] sm:$0xf] }
 0x2c5   : > { %v4167_v56 = vpop.f32.mrf.mxu1  ;;  %v4172_v57 = vpop.f32.mrf.mxu0 }
 0x2c6   : > { %v1016_v58 = vsel %vm813_vm3, %v1002_v55, -inf  ;;  %v1394_v57 = vsel %vm1060_vm4, %v707_v54, 0 }
 0x2c7   : > { %1017 = vmax.xlane.f32.xlu0 %v1016_v58  ;;  %v1004_v59 = vpop.f32.mrf.mxu0 }
 0x2c9   : > { %v4173_v60 = vpop.f32.mrf.mxu0 }
 0x2d0   : > { %1055 = vrot.lane.b32.xlu1 %v4795_v12, %s4551_s18 }
 0x2d7   : > { %v1009_v61 = vpop.xlane.xlu0 %1008 }
 0x2d8   : > { %v1019_v62 = vsub.f32 %v855_v38, %v1009_v61 }
 0x2da   : > { %v1023_v63 = vmul.f32 1.442695, %v1019_v62 }
 0x2dc   : > { %4431 = vpow2.f32 %v1023_v63 }
 0x2e9   : > { %v4432_v0 = vpop.eup %4431 }
 0x2ea   : > { %v1031_v1 = vsel %vm813_vm3, %v4432_v0, 0.0 }
 0x2f4   : > { %1032 = vadd.xlane.f32.xlu1 %v1031_v1 }
 0x348   : > { %v1012_v2 = vpop.xlane.xlu1 %1011 }
 0x349   : > { %v1020_v4 = vsub.f32 %v904_v44, %v1012_v2 }
 0x34b   : > { %v1025_v6 = vmul.f32 1.442695, %v1020_v4 }
 0x34c   : > { %v1015_v7 = vpop.xlane.xlu0 %1014  ;;  %v1056_v8 = vpop.permute.xlu1 %1055 }
 0x34d   : > { %4433 = vpow2.f32 %v1025_v6  ;;  %v1021_v9 = vsub.f32 %v953_v49, %v1015_v7  ;;  %v1062_v10 = vsel %vm1060_vm4, %v1056_v8, 0 }
 0x34e   : > { %4175 = vmatpush3.bf16.msra.mxu1 %v1062_v10 }
 0x34f   : > { %v1027_v11 = vmul.f32 1.442695, %v1021_v9  ;;  %4186 = vmatprep.subr.bf16.mxu1 %v4545_v3 }
 0x350   : > { %v1018_v12 = vpop.xlane.xlu0 %1017 }
 0x351   : > { %4435 = vpow2.f32 %v1027_v11  ;;  %v1022_v13 = vsub.f32 %v1002_v55, %v1018_v12 }
 0x353   : > { %v1029_v14 = vmul.f32 1.442695, %v1022_v13 }
 0x355   : > { %4437 = vpow2.f32 %v1029_v14 }
 0x35a   : > { %v4434_v15 = vpop.eup %4433 }
 0x35b   : > { %v1034_v16 = vsel %vm813_vm3, %v4434_v15, 0.0 }
 0x35c   : > { %1035 = vadd.xlane.f32.xlu0 %v1034_v16 }
 0x35e   : > { %v4436_v19 = vpop.eup %4435 }
 0x35f   : > { %v1037_v20 = vsel %vm813_vm3, %v4436_v19, 0.0 }
 0x360   : > { %1038 = vadd.xlane.f32.xlu1 %v1037_v20 }
 0x362   : > { %v4438_v22 = vpop.eup %4437 }
 0x363   : > { %v1040_v23 = vsel %vm813_vm3, %v4438_v22, 0.0 }
 0x364   : > { %1041 = vadd.xlane.f32.xlu0 %v1040_v23 }
 0x371   : > { %1152 = vrot.lane.b32.xlu1 %v4804_v21, %s4551_s18 }
 0x375   : > { %1200 = vrot.lane.b32.xlu1 %v4798_v17, %s4551_s18 }
 0x37a   : > { %1104 = vrot.lane.b32.xlu0 %v4800_v18, %s4551_s18  ;;  %s5329_s18 = sld [smem:[#allocation9_spill]] }
 0x37d   : > { %v1033_v24 = vpop.xlane.xlu1 %1032 }
 0x37e   : > { %4439 = vrcp.f32 %v1033_v24 }
 0x380   : > { %p3929_p1 = scmp.ge.s32.totalorder %s5329_s18, 3 }
 0x38b   : > { %v4440_v25 = vpop.eup %4439 }
 0x38c   : > { %v1047_v26 = vmul.f32 %v4440_v25, %v4432_v0 }
 0x38e   : > { %v1051_v27 = vpack.c.bf16 %v1047_v26, %v1047_v26 }
 0x390   : > { %4177 = vmatmul.mubr.msk.bf16.vlgmr.msra.gmra.mxu1 %vm813_vm3, %v1051_v27 }
 0x391   : > { %4188 = vmatprep.mubr.msk.bf16.mxu1 %vm4546_vm1, %v4545_v3 }
 0x3e5   : > { %v1036_v28 = vpop.xlane.xlu0 %1035 }
 0x3e6   : > { %4441 = vrcp.f32 %v1036_v28  ;;  %v3755_v28 = vld [vmem:[%s5323_s17] ss:$0 sm:$0xff] }
 0x3e9   : > { %v1039_v29 = vpop.xlane.xlu1 %1038 }
 0x3ea   : > { %4443 = vrcp.f32 %v1039_v29 }
 0x3ed   : > { %v1153_v21 = vpop.permute.xlu1 %1152  ;;  %v1042_v17 = vpop.xlane.xlu0 %1041 }
 0x3ee   : > { %v1158_v30 = vsel %vm1060_vm4, %v1153_v21, 0  ;;  %4445 = vrcp.f32 %v1042_v17 }
 0x3ef   : > { %4187 = vmatpush3.bf16.msra.mxu1 %v1158_v30 }
 0x3f0   : > { %4198 = vmatprep.subr.bf16.mxu1 %v4545_v3 }
 0x3f1   : > { %v1105_v18 = vpop.permute.xlu0 %1104  ;;  %v1201_v34 = vpop.permute.xlu1 %1200 }
 0x3f2   : > { %v1110_v31 = vsel %vm1060_vm4, %v1105_v18, 0  ;;  %v1206_v38 = vsel %vm1060_vm4, %v1201_v34, 0 }
 0x3f3   : > { %v4442_v32 = vpop.eup %4441  ;;  %4181 = vmatpush3.bf16.msra.mxu0 %v1110_v31 }
 0x3f4   : > { %4192 = vmatprep.subr.bf16.mxu0 %v4545_v3  ;;  %v1048_v33 = vmul.f32 %v4442_v32, %v4434_v15 }
 0x3f6   : > { %v1052_v35 = vpack.c.bf16 %v1048_v33, %v1048_v33 }
 0x3f7   : > { %v4444_v36 = vpop.eup %4443 }
 0x3f8   : > { %4183 = vmatmul.mubr.msk.bf16.vlgmr.msra.gmra.mxu0 %vm813_vm3, %v1052_v35  ;;  %v1049_v39 = vmul.f32 %v4444_v36, %v4436_v19 }
 0x3f9   : > { %4193 = vmatpush3.bf16.msra.mxu0 %v1206_v38  ;;  %4194 = vmatprep.mubr.msk.bf16.mxu0 %vm4546_vm1, %v4545_v3 }
 0x3fa   : > { %v1053_v40 = vpack.c.bf16 %v1049_v39, %v1049_v39  ;;  %4204 = vmatprep.subr.bf16.mxu0 %v4545_v3 }
 0x3fb   : > { %v4446_v42 = vpop.eup %4445 }
 0x3fc   : > { %4189 = vmatmul.mubr.msk.bf16.vlgmr.msra.gmra.mxu1 %vm813_vm3, %v1053_v40  ;;  %v1050_v44 = vmul.f32 %v4446_v42, %v4438_v22  ;;  %v1496_v40 = vld [vmem:[%s4753_s4 + $0x80] sm:$0xff]  ;;  %v1497_v42 = vld [vmem:[%s4753_s4 + $0x88] sm:$0xff] }
 0x3fd   : > { %4199 = vmatpush3.bf16.msra.mxu1 %v1256_v41  ;;  %4200 = vmatprep.mubr.msk.bf16.mxu1 %vm4546_vm1, %v4545_v3  ;;  %v1504_v41 = vld [vmem:[%s4753_s4 + $0xc0] sm:$0xff] }
 0x3fe   : > { %v1054_v45 = vpack.c.bf16 %v1050_v44, %v1050_v44  ;;  %4210 = vmatprep.subr.bf16.mxu1 %v4545_v3  ;;  %v3775_v43 = vcombine.high %v1496_v40, %v1504_v41  ;;  %v1505_v44 = vld [vmem:[%s4753_s4 + $0xc8] sm:$0xff] }
 0x400   : > { %4195 = vmatmul.mubr.msk.bf16.vlgmr.msra.gmra.mxu0 %vm813_vm3, %v1054_v45  ;;  %v3776_v45 = vcombine.low %v1497_v42, %v1505_v44 }
 0x401   : > { %4205 = vmatpush3.bf16.msra.mxu0 %v1302_v46  ;;  %4206 = vmatprep.mubr.msk.bf16.mxu0 %vm4546_vm1, %v4545_v3  ;;  %v3777_v46 = vcombine.high %v1497_v42, %v1505_v44  ;;  %v1494_v42 = vld [vmem:[%s4753_s4 + $0x70] sm:$0xff]  ;;  %v1495_v44 = vld [vmem:[%s4753_s4 + $0x78] sm:$0xff] }
 0x402   : > { %4216 = vmatprep.subr.bf16.mxu0 %v4545_v3 }
 0x450   : > { %v1098_v48 = vpop.f32.mrf.mxu1 }
 0x451   : > { %v1248_v49 = vpack.c.bf16 %v1098_v48, %v1098_v48  ;;  %v1488_v48 = vld [vmem:[%s4753_s4 + $0x40] sm:$0xff] }
 0x452   : > { %v4178_v51 = vpop.f32.mrf.mxu1 }
 0x453   : > { %4201 = vmatmul.mubr.msk.bf16.vlgmr.msra.gmra.mxu1 %vm813_vm3, %v1248_v49  ;;  %v1481_v49 = vld [vmem:[%s4753_s4 + $0x8] sm:$0xff] }
 0x454   : > { %v1101_v52 = vpop.f32.mrf.mxu1  ;;  %4211 = vmatpush3.bf16.msra.mxu1 %v1348_v50  ;;  %4212 = vmatprep.mubr.msk.bf16.mxu1 %vm4546_vm1, %v4545_v3  ;;  %v3759_v50 = vcombine.high %v1480_v47, %v1488_v48  ;;  %v1489_v51 = vld [vmem:[%s4753_s4 + $0x48] sm:$0xff] }
 0x455   : > { %1769 = vmatprep.subr.bf16.mxu1 %v3775_v43  ;;  %v3758_v52 = vcombine.low %v1480_v47, %v1488_v48  ;;  %v3761_v54 = vcombine.high %v1481_v49, %v1489_v51  ;;  %v1487_v43 = vld [vmem:[%s4753_s4 + $0x38] sm:$0xff] }
 0x456   : > { %v4179_v53 = vpop.f32.mrf.mxu1  ;;  %v3773_v47 = vcombine.high %v1487_v43, %v1495_v44 }
 0x457   : > { %v3760_v53 = vcombine.low %v1481_v49, %v1489_v51  ;;  %v3772_v49 = vcombine.low %v1487_v43, %v1495_v44  ;;  %v4304_v51 = vld [vmem:[%s4759_s21 + $0xf8] sm:$0xff]  }
 0x4b8   : > { %v1146_v55 = vpop.f32.mrf.mxu0 }
 0x4b9   : > { %v1249_v56 = vpack.c.bf16 %v1146_v55, %v1146_v55  ;;  %v1498_v55 = vld [vmem:[%s4753_s4 + $0x90] sm:$0xff] }
 0x4ba   : > { %v4184_v58 = vpop.f32.mrf.mxu0 }
 0x4bb   : > { %4207 = vmatmul.mubr.msk.bf16.vlgmr.msra.gmra.mxu0 %vm813_vm3, %v1249_v56  ;;  %v1506_v56 = vld [vmem:[%s4753_s4 + $0xd0] sm:$0xff]  ;;  %v4552_v58 = vmov 0  }
 0x4bc   : > { %v1149_v59 = vpop.f32.mrf.mxu0  ;;  %v1194_v60 = vpop.f32.mrf.mxu1  ;;  %4217 = vmatpush3.bf16.msra.mxu0 %v1394_v57  ;;  %4218 = vmatprep.mubr.msk.bf16.mxu0 %vm4546_vm1, %v4545_v3  ;;  %v1499_v57 = vld [vmem:[%s4753_s4 + $0x98] sm:$0xff] }
 0x4bd   : > { %v1250_v61 = vpack.c.bf16 %v1194_v60, %v1194_v60  ;;  %1810 = vmatprep.subr.bf16.mxu0 %v3777_v46  ;;  %v3779_v59 = vcombine.high %v1498_v55, %v1506_v56  ;;  %v1507_v60 = vld [vmem:[%s4753_s4 + $0xd8] sm:$0xff] }
 0x4be   : > { %v4185_v62 = vpop.f32.mrf.mxu0  ;;  %v4190_v63 = vpop.f32.mrf.mxu1 }
 0x4bf   : > { %4213 = vmatmul.mubr.msk.bf16.vlgmr.msra.gmra.mxu1 %vm813_vm3, %v1250_v61  ;;  %v3778_v61 = vcombine.low %v1498_v55, %v1506_v56  ;;  %v3780_v62 = vcombine.low %v1499_v57, %v1507_v60  ;;  %v3781_v63 = vcombine.high %v1499_v57, %v1507_v60  ;;  %v4308_v55 = vld [vmem:[%s4759_s21 + $0xf0] sm:$0xff]   ;;  %v4313_v60 = vld [vmem:[%s4759_s21 + $0x28] sm:$0xff]  }
 0x4c0   : > { %v1197_v0 = vpop.f32.mrf.mxu1  ;;  %v1242_v1 = vpop.f32.mrf.mxu0  ;;  %1789 = vmatprep.mubr.bf16.mxu1 %v4552_v58  ;;  %v4309_v56 = vld [vmem:[%s4759_s21 + $0x30] sm:$0xff]  }
 0x4c1   : > { %v1251_v2 = vpack.c.bf16 %v1242_v1, %v1242_v1  ;;  %v4310_v57 = vld [vmem:[%s4759_s21 + $0xb0] sm:$0xff]  }
 0x4c2   : > { %v4191_v4 = vpop.f32.mrf.mxu1  ;;  %v4196_v6 = vpop.f32.mrf.mxu0 }
 0x4c3   : > { %4219 = vmatmul.mubr.msk.bf16.vlgmr.msra.gmra.mxu0 %vm813_vm3, %v1251_v2  ;;  %v3756_v6 = vld [vmem:[%s5324_s9] ss:$0 sm:$0xff] }
 0x4c4   : > { %v1245_v7 = vpop.f32.mrf.mxu0  ;;  %1811 = vmatpush1.bf16.msra.mxu0 %v3776_v45  ;;  %1830 = vmatprep.mubr.bf16.mxu0 %v4552_v58 }
 0x4c5   : > { %1812 = vmatprep.subr.bf16.mxu0 %v3761_v54  ;;  %v4307_v54 = vld [vmem:[%s4759_s21 + $0x70] sm:$0xff]  }
 0x4c6   : > { %v4197_v8 = vpop.f32.mrf.mxu0 }
 0x4c7   : > { %v3757_v8 = vld [vmem:[%s5325_s26] ss:$0 sm:$0xff] }
 0x4c8   : > { %1813 = vmatpush1.bf16.msra.mxu0 %v3760_v53  ;;  %v4306_v53 = vld [vmem:[%s4759_s21 + $0xb8] sm:$0xff]  }
 0x4c9   : > { %1892 = vmatprep.subr.bf16.mxu0 %v3781_v63  ;;  %v4316_v63 = vld [vmem:[%s4759_s21 + $0xe0] sm:$0xff]  }
 0x513   : > { %v1292_v9 = vpop.f32.mrf.mxu1 }
 0x514   : > { %v1436_v19 = vsel %vm731_vm2, %v1292_v9, 0.0 }
 0x515   : > { %v4202_v10 = vpop.f32.mrf.mxu1 }
 0x516   : > { %v1482_v10 = vld [vmem:[%s4753_s4 + $0x10] sm:$0xff] }
 0x517   : > { %v1295_v11 = vpop.f32.mrf.mxu1 }
 0x518   : > { %v1490_v11 = vld [vmem:[%s4753_s4 + $0x50] sm:$0xff] }
 0x519   : > { %v4203_v12 = vpop.f32.mrf.mxu1 }
 0x51a   : > { %v1483_v12 = vld [vmem:[%s4753_s4 + $0x18] sm:$0xff] }
 0x57b   : > { %v1338_v3 = vpop.f32.mrf.mxu0 }
 0x57c   : > { %v1437_v14 = vsel %vm731_vm2, %v1338_v3, 0.0  ;;  %v1491_v3 = vld [vmem:[%s4753_s4 + $0x58] sm:$0xff] }
 0x57d   : > { %v4208_v13 = vpop.f32.mrf.mxu0  ;;  %v1438_v22 = vadd.f32 %v1437_v14, %v1436_v19  ;;  %v1500_v19 = vld [vmem:[%s4753_s4 + $0xa0] sm:$0xff] }
 0x57f   : > { %v1341_v15 = vpop.f32.mrf.mxu0  ;;  %v1384_v16 = vpop.f32.mrf.mxu1 }
 0x580   : > { %v1439_v20 = vsel %vm731_vm2, %v1384_v16, 0.0  ;;  %v3763_v15 = vcombine.high %v1482_v10, %v1490_v11  ;;  %v3765_v16 = vcombine.high %v1483_v12, %v1491_v3 }
 0x581   : > { %v4209_v23 = vpop.f32.mrf.mxu0  ;;  %v4214_v24 = vpop.f32.mrf.mxu1  ;;  %v1440_v25 = vadd.f32 %v1439_v20, %v1438_v22  ;;  %v1508_v20 = vld [vmem:[%s4753_s4 + $0xe0] sm:$0xff]  ;;  %v1501_v22 = vld [vmem:[%s4753_s4 + $0xa8] sm:$0xff] }
 0x582   : > { %v1509_v23 = vld [vmem:[%s4753_s4 + $0xe8] sm:$0xff]  ;;  %v3762_v24 = vcombine.low %v1482_v10, %v1490_v11  ;;  %v4325_v10 = vld [vmem:[%s4759_s21 + $0x10] sm:$0xff]  }
 0x583   : > { %v1387_v26 = vpop.f32.mrf.mxu1  ;;  %v1430_v27 = vpop.f32.mrf.mxu0  ;;  %v4326_v11 = vld [vmem:[%s4759_s21 + $0x90] sm:$0xff]  }
 0x584   : > { %v1441_v29 = vsel %vm731_vm2, %v1430_v27, 0.0  ;;  %v3783_v26 = vcombine.high %v1500_v19, %v1508_v20  ;;  %v3785_v27 = vcombine.high %v1501_v22, %v1509_v23 }
 0x585   : > { %v1442_v21 = vadd.f32 %v1441_v29, %v1440_v25  ;;  %v4215_v17 = vpop.f32.mrf.mxu1  ;;  %v4220_v30 = vpop.f32.mrf.mxu0  ;;  %v3764_v25 = vcombine.low %v1483_v12, %v1491_v3  ;;  %v1492_v29 = vld [vmem:[%s4753_s4 + $0x60] sm:$0xff]  ;;  %v4327_v12 = vld [vmem:[%s4759_s21 + $0x48] sm:$0xff]  }
 0x586   : > { %v1493_v17 = vld [vmem:[%s4753_s4 + $0x68] sm:$0xff]  ;;  %v3782_v30 = vcombine.low %v1500_v19, %v1508_v20  ;;  %v4332_v19 = vld [vmem:[%s4759_s21 + $0xc0] sm:$0xff]  }
 0x587   : > { %v1449_v18 = vadd.f32 %v3755_v28, %v1442_v21  ;;  %v1433_v31 = vpop.f32.mrf.mxu0  ;;  %v1484_v28 = vld [vmem:[%s4753_s4 + $0x20] sm:$0xff]  ;;  %v1485_v21 = vld [vmem:[%s4753_s4 + $0x28] sm:$0xff] }
 0x588   : > { %v3767_v31 = vcombine.high %v1484_v28, %v1492_v29  ;;  %v4328_v3 = vld [vmem:[%s4759_s21 + $0xc8] sm:$0xff]   ;;  %v4333_v20 = vld [vmem:[%s4759_s21] sm:$0xff]  }
 0x589   : > { %v4221_v32 = vpop.f32.mrf.mxu0  ;;  %v1450_v33 = vadd.f32 %v1449_v18, %v4779_v5  ;;  %v3774_v5 = vcombine.low %v1496_v40, %v1504_v41  ;;  %v3784_v18 = vcombine.low %v1501_v22, %v1509_v23  ;;  %v1486_v41 = vld [vmem:[%s4753_s4 + $0x30] sm:$0xff]  ;;  %v4334_v22 = vld [vmem:[%s4759_s21 + $0x80] sm:$0xff]   ;;  %v4335_v23 = vld [vmem:[%s4759_s21 + $0x178] sm:$0xff]  }
 0x58a   : > { %v3769_v32 = vcombine.high %v1485_v21, %v1493_v17  ;;  %v3771_v46 = vcombine.high %v1486_v41, %v1494_v42  ;;  %v3770_v48 = vcombine.low %v1486_v41, %v1494_v42 }
 0x58b   : > { %v1451_v34 = vsel %vm731_vm2, %v1450_v33, 0.0  ;;  %1770 = vmatpush1.bf16.msra.mxu1 %v3774_v5 }
 0x58c   : > { %1452 = vadd.xlane.f32.xlu0 %v1451_v34  ;;  %1771 = vmatprep.subr.bf16.mxu1 %v3759_v50  ;;  %v1510_v34 = vld [vmem:[%s4753_s4 + $0xf0] sm:$0xff]  ;;  %v4303_v50 = vld [vmem:[%s4759_s21 + $0x78] sm:$0xff]  }
 0x58f   : > { %1772 = vmatpush1.bf16.msra.mxu1 %v3758_v52  ;;  %v4305_v52 = vld [vmem:[%s4759_s21 + $0x38] sm:$0xff]  }
 0x590   : > { %1851 = vmatprep.subr.bf16.mxu1 %v3779_v59  ;;  %v4312_v59 = vld [vmem:[%s4759_s21 + $0xe8] sm:$0xff]  }
 0x615   : > { %v1453_v35 = vpop.xlane.xlu0 %1452 }
 0x616   : > { %v1455_v36 = vmul.f32 0.03125, %v1453_v35  ;;  %v1503_v35 = vld [vmem:[%s4753_s4 + $0xb8] sm:$0xff] }
 0x618   : > { %v1456_v37 = vsub.f32 %v1450_v33, %v1455_v36  ;;  %v1502_v33 = vld [vmem:[%s4753_s4 + $0xb0] sm:$0xff]  ;;  %v1511_v36 = vld [vmem:[%s4753_s4 + $0xf8] sm:$0xff]  ;;  %s5326_s4 = sld [smem:[#allocation19_spill]] }
 0x619   : > { %v3789_v40 = vcombine.high %v1503_v35, %v1511_v36  ;;  %v3786_v5 = vcombine.low %v1502_v33, %v1510_v34  ;;  %v3788_v45 = vcombine.low %v1503_v35, %v1511_v36 }
 0x61a   : > { %v1457_v38 = vmul.f32 %v1456_v37, %v1456_v37 }
 0x61c   : > { %v1458_v39 = vsel %vm731_vm2, %v1457_v38, 0.0  ;;  %v3768_v38 = vcombine.low %v1485_v21, %v1493_v17 }
 0x61d   : > { %1459 = vadd.xlane.f32.xlu1 %v1458_v39  ;;  %v3787_v39 = vcombine.high %v1502_v33, %v1510_v34 }
 0x6a6   : > { %v1460_v0 = vpop.xlane.xlu1 %1459 }
 0x6a7   : > { %v1461_v1 = vmul.f32 0.03125, %v1460_v0  ;;  %v4317_v0 = vld [vmem:[%s4759_s21 + $0x20] sm:$0xff]  }
 0x6a9   : > { %v1462_v2 = vadd.f32 1e-05, %v1461_v1  ;;  %v4318_v1 = vld [vmem:[%s4759_s21 + $0xa0] sm:$0xff]  }
 0x6ab   : > { %4447 = vrsqrt.f32 %v1462_v2  ;;  %v4319_v2 = vld [vmem:[%s4759_s21 + $0x58] sm:$0xff]  }
 0x6b8   : > { %v4448_v4 = vpop.eup %4447 }
 0x6b9   : > { %v1464_v7 = vmul.f32 %v4448_v4, %v1456_v37  ;;  %v3766_v37 = vcombine.low %v1484_v28, %v1492_v29  ;;  %v4320_v4 = vld [vmem:[%s4759_s21 + $0xd8] sm:$0xff]   ;;  %v5008_v28 = vld [vmem:[%s5326_s4 + $0x8] sm:$0xff] }
 0x6bb   : > { %v1471_v9 = vmul.f32 %v3756_v6, %v1464_v7  ;;  %v4321_v6 = vld [vmem:[%s4759_s21 + $0x18] sm:$0xff]  }
 0x6bc   : > { %v4322_v7 = vld [vmem:[%s4759_s21 + $0x98] sm:$0xff]  }
 0x6bd   : > { %v4926_v13 = vadd.f32 %v3757_v8, %v1471_v9  ;;  %v4323_v8 = vld [vmem:[%s4759_s21 + $0x50] sm:$0xff]  }
 0x6be   : > { %v4324_v9 = vld [vmem:[%s4759_s21 + $0xd0] sm:$0xff]  }
 0x6bf   : > { %v4930_v14 = vpack.c.bf16 %v4926_v13, %v4926_v13 }
 0x6c1   : > { %3790 = vmatmul.mubr.msk.bf16.vlgmr.msra.gmra.mxu1 %vm731_vm2, %v4930_v14  ;;  %3791 = vmatmul.mubr.msk.bf16.vlgmr.msra.gmra.mxu0 %vm731_vm2, %v4930_v14 }
 0x6c2   : > { %1852 = vmatpush1.bf16.msra.mxu1 %v3778_v61  ;;  %1893 = vmatpush1.bf16.msra.mxu0 %v3780_v62  ;;  %v4314_v61 = vld [vmem:[%s4759_s21 + $0xa8] sm:$0xff]   ;;  %v4315_v62 = vld [vmem:[%s4759_s21 + $0x60] sm:$0xff]  }
 0x6c3   : > { %1853 = vmatprep.subr.bf16.mxu1 %v3763_v15  ;;  %1894 = vmatprep.subr.bf16.mxu0 %v3765_v16  ;;  %v4330_v15 = vld [vmem:[%s4759_s21 + $0x88] sm:$0xff]   ;;  %v4331_v16 = vld [vmem:[%s4759_s21 + $0x40] sm:$0xff]  }
 0x6c4   : > { %1871 = vmatprep.mubr.bf16.mxu1 %v4552_v58  ;;  %1912 = vmatprep.mubr.bf16.mxu0 %v4552_v58 }
 0x6c6   : > { %1854 = vmatpush1.bf16.msra.mxu1 %v3762_v24  ;;  %1895 = vmatpush1.bf16.msra.mxu0 %v3764_v25  ;;  %v4336_v24 = vld [vmem:[%s4759_s21 + $0x1f8] sm:$0xff]   ;;  %v1514_v25 = vlaneseq }
 0x6c7   : > { %1933 = vmatprep.subr.bf16.mxu1 %v3783_v26  ;;  %1974 = vmatprep.subr.bf16.mxu0 %v3785_v27 }
 0x6c8   : > { %v5004_v26 = vshrl.u32 %v1514_v25, 7 }
 0x6c9   : > { %3792 = vmatmul.mubr.msk.bf16.vlgmr.msra.gmra.mxu1 %vm731_vm2, %v4930_v14  ;;  %3793 = vmatmul.mubr.msk.bf16.vlgmr.msra.gmra.mxu0 %vm731_vm2, %v4930_v14 }
 0x6ca   : > { %1934 = vmatpush1.bf16.msra.mxu1 %v3782_v30  ;;  %1975 = vmatpush1.bf16.msra.mxu0 %v3784_v18  ;;  %v1540_v27 = vsub.s32 6, %v5004_v26  ;;  %v1516_v21 = vsub.s32 0, %v5004_v26  ;;  %v1524_v17 = vsub.s32 2, %v5004_v26  ;;  %v5018_v30 = vld [vmem:[%s5326_s4] sm:$0xff]  ;;  %v1520_v18 = vsub.s32 1, %v5004_v26 }
 0x6cb   : > { %1935 = vmatprep.subr.bf16.mxu1 %v3767_v31  ;;  %1976 = vmatprep.subr.bf16.mxu0 %v3769_v32  ;;  %v1528_v31 = vsub.s32 3, %v5004_v26  ;;  %v1536_v44 = vsub.s32 5, %v5004_v26 }
 0x6cc   : > { %1953 = vmatprep.mubr.bf16.mxu1 %v4552_v58  ;;  %1994 = vmatprep.mubr.bf16.mxu0 %v4552_v58  ;;  %v5013_v29 = vrot.slane %v5008_v28, %v1540_v27  ;;  %v1517_v32 = vrot.slane %v5018_v30, %v1516_v21  ;;  %v1525_v33 = vrot.slane %v5018_v30, %v1524_v17 }
 0x6cd   : > { %v1521_v34 = vrot.slane %v5018_v30, %v1520_v18  ;;  %v1529_v35 = vrot.slane %v5018_v30, %v1528_v31 }
 0x6ce   : > { %1936 = vmatpush1.bf16.msra.mxu1 %v3766_v37  ;;  %1977 = vmatpush1.bf16.msra.mxu0 %v3768_v38 }
 0x6cf   : > { %2015 = vmatprep.subr.bf16.mxu1 %v3787_v39  ;;  %2056 = vmatprep.subr.bf16.mxu0 %v3789_v40 }
 0x6d1   : > { %3794 = vmatmul.mubr.msk.bf16.vlgmr.msra.gmra.mxu1 %vm731_vm2, %v4930_v14  ;;  %3795 = vmatmul.mubr.msk.bf16.vlgmr.msra.gmra.mxu0 %vm731_vm2, %v4930_v14 }
 0x6d2   : > { %2016 = vmatpush1.bf16.msra.mxu1 %v3786_v5  ;;  %2057 = vmatpush1.bf16.msra.mxu0 %v3788_v45  ;;  %v1544_v5 = vsub.s32 7, %v5004_v26 }
 0x6d3   : > { %2017 = vmatprep.subr.bf16.mxu1 %v3771_v46  ;;  %2058 = vmatprep.subr.bf16.mxu0 %v3773_v47 }
 0x6d4   : > { %2035 = vmatprep.mubr.bf16.mxu1 %v4552_v58  ;;  %2076 = vmatprep.mubr.bf16.mxu0 %v4552_v58  ;;  %v4311_v58 = vld [vmem:[%s4759_s21 + $0x68] sm:$0xff]  }
 0x6d6   : > { %2018 = vmatpush1.bf16.msra.mxu1 %v3770_v48  ;;  %2059 = vmatpush1.bf16.msra.mxu0 %v3772_v49 }
 0x6d7   : > { %3966 = vmatprep.subr.bf16.mxu1 %v4303_v50  ;;  %3988 = vmatprep.subr.bf16.mxu0 %v4304_v51 }
 0x6d9   : > { %3796 = vmatmul.mubr.msk.bf16.vlgmr.msra.gmra.mxu1 %vm731_vm2, %v4930_v14  ;;  %3797 = vmatmul.mubr.msk.bf16.vlgmr.msra.gmra.mxu0 %vm731_vm2, %v4930_v14  ;;  %v4329_v14 = vld [vmem:[%s4759_s21 + $0x8] sm:$0xff]  }
 0x6da   : > { %3967 = vmatpush3.bf16.msra.mxu1 %v4305_v52  ;;  %3989 = vmatpush3.bf16.msra.mxu0 %v4306_v53 }
 0x6db   : > { %3968 = vmatprep.subr.bf16.mxu1 %v4307_v54  ;;  %3990 = vmatprep.subr.bf16.mxu0 %v4308_v55  ;;  %v1537_v55 = vrot.slane %v5018_v30, %v1536_v44 }
 0x6de   : > { %3969 = vmatpush3.bf16.msra.mxu1 %v4309_v56  ;;  %3991 = vmatpush3.bf16.msra.mxu0 %v4310_v57  ;;  %v1545_v56 = vrot.slane %v5018_v30, %v1544_v5  ;;  %v4337_v57 = vld [vmem:[%s4759_s21 + $0x138] sm:$0xff]  }
 0x6df   : > { %3970 = vmatprep.subr.bf16.mxu1 %v4311_v58  ;;  %3992 = vmatprep.subr.bf16.mxu0 %v4312_v59  ;;  %v4338_v58 = vld [vmem:[%s4759_s21 + $0x1b8] sm:$0xff]  }
 0x6e2   : > { %3971 = vmatpush3.bf16.msra.mxu1 %v4313_v60  ;;  %3993 = vmatpush3.bf16.msra.mxu0 %v4314_v61 }
 0x6e3   : > { %3972 = vmatprep.subr.bf16.mxu1 %v4315_v62  ;;  %3994 = vmatprep.subr.bf16.mxu0 %v4316_v63  ;;  %v4339_v63 = vld [vmem:[%s4759_s21 + $0x170] sm:$0xff]  }
 0x6e6   : > { %3973 = vmatpush3.bf16.msra.mxu1 %v4317_v0  ;;  %3995 = vmatpush3.bf16.msra.mxu0 %v4318_v1  ;;  %v4340_v0 = vld [vmem:[%s4759_s21 + $0x1f0] sm:$0xff]  }
 0x6e7   : > { %3974 = vmatprep.subr.bf16.mxu1 %v4319_v2  ;;  %3996 = vmatprep.subr.bf16.mxu0 %v4320_v4 }
 0x6ea   : > { %3975 = vmatpush3.bf16.msra.mxu1 %v4321_v6  ;;  %3997 = vmatpush3.bf16.msra.mxu0 %v4322_v7  ;;  %v4341_v7 = vld [vmem:[%s4759_s21 + $0x130] sm:$0xff]  }
 0x6eb   : > { %3976 = vmatprep.subr.bf16.mxu1 %v4323_v8  ;;  %3998 = vmatprep.subr.bf16.mxu0 %v4324_v9  ;;  %v4342_v8 = vld [vmem:[%s4759_s21 + $0x1b0] sm:$0xff]  }
 0x6ee   : > { %3977 = vmatpush3.bf16.msra.mxu1 %v4325_v10  ;;  %3999 = vmatpush3.bf16.msra.mxu0 %v4326_v11  ;;  %v4343_v11 = vld [vmem:[%s4759_s21 + $0x168] sm:$0xff]  }
 0x6ef   : > { %3978 = vmatprep.subr.bf16.mxu1 %v4327_v12  ;;  %4000 = vmatprep.subr.bf16.mxu0 %v4328_v3  ;;  %v4344_v12 = vld [vmem:[%s4759_s21 + $0x1e8] sm:$0xff]  }
 0x6f2   : > { %3979 = vmatpush3.bf16.msra.mxu1 %v4329_v14  ;;  %4001 = vmatpush3.bf16.msra.mxu0 %v4330_v15 }
 0x6f3   : > { %3980 = vmatprep.subr.bf16.mxu1 %v4331_v16  ;;  %4002 = vmatprep.subr.bf16.mxu0 %v4332_v19 }
 0x6f6   : > { %3981 = vmatpush3.bf16.msra.mxu1 %v4333_v20  ;;  %4003 = vmatpush3.bf16.msra.mxu0 %v4334_v22  ;;  %v4345_v22 = vld [vmem:[%s4759_s21 + $0x128] sm:$0xff]  }
 0x6f7   : > { %4010 = vmatprep.subr.bf16.mxu1 %v4335_v23  ;;  %4032 = vmatprep.subr.bf16.mxu0 %v4336_v24  ;;  %v4346_v23 = vld [vmem:[%s4759_s21 + $0x1a8] sm:$0xff]  }
 0x781   : > { %v1791_v36 = vpop.f32.mrf.mxu1  ;;  %v1832_v37 = vpop.f32.mrf.mxu0 }
 0x782   : > { %v1792_v38 = vadd.f32 %v1791_v36, %v1517_v32  ;;  %v1833_v39 = vadd.f32 %v1832_v37, %v1525_v33  ;;  %v4347_v32 = vld [vmem:[%s4759_s21 + $0x160] sm:$0xff]   ;;  %v1532_v36 = vsub.s32 4, %v5004_v26 }
 0x783   : > { %v1793_v40 = vpop.f32.mrf.mxu1  ;;  %v1834_v41 = vpop.f32.mrf.mxu0  ;;  %v4348_v33 = vld [vmem:[%s4759_s21 + $0x1e0] sm:$0xff]  }
 0x784   : > { %v1794_v42 = vadd.f32 %v1793_v40, %v1521_v34  ;;  %v1835_v43 = vadd.f32 %v1834_v41, %v1529_v35  ;;  %v2085_v45 = vmax.f32 %v1792_v38, 0.0  ;;  %v2087_v46 = vmax.f32 %v1833_v39, 0.0  ;;  %v4349_v37 = vld [vmem:[%s4759_s21 + $0x120] sm:$0xff]   ;;  %v4351_v41 = vld [vmem:[%s4759_s21 + $0x158] sm:$0xff]  }
 0x785   : > { %v1795_v47 = vpop.f32.mrf.mxu1  ;;  %v1836_v48 = vpop.f32.mrf.mxu0  ;;  %v4350_v38 = vld [vmem:[%s4759_s21 + $0x1a0] sm:$0xff]  }
 0x786   : > { %v2086_v49 = vmax.f32 %v1794_v42, 0.0  ;;  %v2088_v50 = vmax.f32 %v1835_v43, 0.0  ;;  %v2101_v59 = vpack.c.bf16 %v2085_v45, %v2085_v45  ;;  %v2103_v60 = vpack.c.bf16 %v2087_v46, %v2087_v46  ;;  %v4352_v42 = vld [vmem:[%s4759_s21 + $0x1d8] sm:$0xff]  }
 0x787   : > { %v1796_v51 = vpop.f32.mrf.mxu1  ;;  %v1837_v52 = vpop.f32.mrf.mxu0  ;;  %v1565_v43 = vrot.slane %v5008_v28, %v1532_v36  ;;  %v4353_v47 = vld [vmem:[%s4759_s21 + $0x118] sm:$0xff]  }
 0x788   : > { %v2102_v53 = vpack.c.bf16 %v2086_v49, %v2086_v49  ;;  %v2104_v54 = vpack.c.bf16 %v2088_v50, %v2088_v50  ;;  %v4354_v48 = vld [vmem:[%s4759_s21 + $0x198] sm:$0xff]   ;;  %v4355_v51 = vld [vmem:[%s4759_s21 + $0x150] sm:$0xff]  }
 0x789   : > { %v5044_v61 = vpop.f32.mrf.mxu1  ;;  %v5046_v62 = vpop.f32.mrf.mxu0  ;;  %v4356_v52 = vld [vmem:[%s4759_s21 + $0x1d0] sm:$0xff]  }
 0x78a   : > { %3179 = vmatprep.mubr.bf16.mxu1 %v2102_v53  ;;  %3219 = vmatprep.mubr.bf16.mxu0 %v2104_v54 }
 0x78b   : > { %v1875_v1 = vpop.f32.mrf.mxu1  ;;  %v1916_v2 = vpop.f32.mrf.mxu0  ;;  %3180 = vmatmul.mubr.bf16.vlgmr.msra.gmra.mxu1 %v2101_v59  ;;  %3220 = vmatmul.mubr.bf16.vlgmr.msra.gmra.mxu0 %v2103_v60  ;;  %v1533_v59 = vrot.slane %v5018_v30, %v1532_v36  ;;  %v1541_v60 = vrot.slane %v5018_v30, %v1540_v27  ;;  %v4361_v27 = vld [vmem:[%s4759_s21 + $0x108] sm:$0xff]  }
 0x78c   : > { %v1876_v4 = vadd.f32 %v1875_v1, %v1537_v55  ;;  %v1917_v6 = vadd.f32 %v1916_v2, %v1545_v56  ;;  %4011 = vmatpush3.bf16.msra.mxu1 %v4337_v57  ;;  %4033 = vmatpush3.bf16.msra.mxu0 %v4338_v58  ;;  %v4357_v57 = vld [vmem:[%s4759_s21 + $0x110] sm:$0xff]   ;;  %v4360_v1 = vld [vmem:[%s4759_s21 + $0x1c8] sm:$0xff]   ;;  %v1553_v2 = vrot.slane %v5008_v28, %v1520_v18  ;;  %v4363_v18 = vld [vmem:[%s4759_s21 + $0x140] sm:$0xff]  }
 0x78d   : > { %v1877_v9 = vpop.f32.mrf.mxu1  ;;  %v1918_v10 = vpop.f32.mrf.mxu0  ;;  %4012 = vmatprep.subr.bf16.mxu1 %v4339_v63  ;;  %4034 = vmatprep.subr.bf16.mxu0 %v4340_v0  ;;  %v4358_v58 = vld [vmem:[%s4759_s21 + $0x190] sm:$0xff]   ;;  %v4362_v30 = vld [vmem:[%s4759_s21 + $0x188] sm:$0xff]  }
 0x78e   : > { %v2090_v3 = vmax.f32 %v1876_v4, 0.0  ;;  %v2092_v14 = vmax.f32 %v1917_v6, 0.0  ;;  %v1561_v4 = vrot.slane %v5008_v28, %v1528_v31  ;;  %v1915_v9 = vadd.f32 %v5046_v62, %v1541_v60  ;;  %v4364_v10 = vld [vmem:[%s4759_s21 + $0x1c0] sm:$0xff]   ;;  %v4368_v62 = vld [vmem:[%s4759_s21 + $0x2f8] sm:$0xff]   ;;  %v4390_v60 = vld [vmem:[%s4759_s21 + $0x290] sm:$0xff]  }
 0x78f   : > { %v1878_v15 = vpop.f32.mrf.mxu1  ;;  %v1919_v16 = vpop.f32.mrf.mxu0 }
 0x790   : > { %v2106_v19 = vpack.c.bf16 %v2090_v3, %v2090_v3  ;;  %v2108_v20 = vpack.c.bf16 %v2092_v14, %v2092_v14  ;;  %4013 = vmatpush3.bf16.msra.mxu1 %v4341_v7  ;;  %4035 = vmatpush3.bf16.msra.mxu0 %v4342_v8  ;;  %v1874_v8 = vadd.f32 %v5044_v61, %v1533_v59  ;;  %v4366_v3 = vld [vmem:[%s4759_s21 + $0x180] sm:$0xff]   ;;  %v2091_v15 = vmax.f32 %v1915_v9, 0.0  ;;  %v4367_v61 = vld [vmem:[%s4759_s21 + $0x278] sm:$0xff]  }
 0x791   : > { %v5056_v24 = vpop.f32.mrf.mxu1  ;;  %v5058_v25 = vpop.f32.mrf.mxu0  ;;  %4014 = vmatprep.subr.bf16.mxu1 %v4343_v11  ;;  %4036 = vmatprep.subr.bf16.mxu0 %v4344_v12  ;;  %v4365_v12 = vld [vmem:[%s4759_s21 + $0x100] sm:$0xff]   ;;  %v1549_v59 = vrot.slane %v5008_v28, %v1516_v21  ;;  %v1577_v21 = vrot.slane %v5008_v28, %v1544_v5 }
 0x792   : > { %3259 = vmatprep.mubr.bf16.mxu1 %v2106_v19  ;;  %3299 = vmatprep.mubr.bf16.mxu0 %v2108_v20  ;;  %v2089_v14 = vmax.f32 %v1874_v8, 0.0  ;;  %v4369_v20 = vld [vmem:[%s4759_s21 + $0x238] sm:$0xff]  }
 0x793   : > { %v1957_v34 = vpop.f32.mrf.mxu1  ;;  %v1998_v35 = vpop.f32.mrf.mxu0 }
 0x794   : > { %4015 = vmatpush3.bf16.msra.mxu1 %v4345_v22  ;;  %4037 = vmatpush3.bf16.msra.mxu0 %v4346_v23  ;;  %v1958_v11 = vadd.f32 %v1957_v34, %v1553_v2  ;;  %v1999_v31 = vadd.f32 %v1998_v35, %v1561_v4  ;;  %v2105_v22 = vpack.c.bf16 %v2089_v14, %v2089_v14  ;;  %v4371_v34 = vld [vmem:[%s4759_s21 + $0x270] sm:$0xff]   ;;  %v4393_v2 = vld [vmem:[%s4759_s21 + $0x208] sm:$0xff]  }
 0x795   : > { %v1959_v39 = vpop.f32.mrf.mxu1  ;;  %v2000_v40 = vpop.f32.mrf.mxu0  ;;  %4016 = vmatprep.subr.bf16.mxu1 %v4347_v32  ;;  %4038 = vmatprep.subr.bf16.mxu0 %v4348_v33  ;;  %v2107_v23 = vpack.c.bf16 %v2091_v15, %v2091_v15  ;;  %v4370_v32 = vld [vmem:[%s4759_s21 + $0x2b8] sm:$0xff]   ;;  %v4372_v35 = vld [vmem:[%s4759_s21 + $0x2f0] sm:$0xff]   ;;  %v1956_v4 = vadd.f32 %v5056_v24, %v1549_v59  ;;  %v4398_v24 = vld [vmem:[%s4759_s21 + $0x280] sm:$0xff]  }
 0x796   : > { %v2094_v16 = vmax.f32 %v1958_v11, 0.0  ;;  %v2096_v19 = vmax.f32 %v1999_v31, 0.0  ;;  %v4375_v39 = vld [vmem:[%s4759_s21 + $0x268] sm:$0xff]   ;;  %v4403_v31 = vld [vmem:[%s4759_s21 + $0x370] sm:$0xff]  }
 0x797   : > { %v1960_v45 = vpop.f32.mrf.mxu1  ;;  %v2001_v46 = vpop.f32.mrf.mxu0  ;;  %v4376_v40 = vld [vmem:[%s4759_s21 + $0x2e8] sm:$0xff]   ;;  %v2093_v5 = vmax.f32 %v1956_v4, 0.0  ;;  %v4405_v15 = vld [vmem:[%s4759_s21 + $0x330] sm:$0xff]  }
 0x798   : > { %4017 = vmatpush3.bf16.msra.mxu1 %v4349_v37  ;;  %4039 = vmatpush3.bf16.msra.mxu0 %v4350_v38  ;;  %v2110_v33 = vpack.c.bf16 %v2094_v16, %v2094_v16  ;;  %v2112_v36 = vpack.c.bf16 %v2096_v19, %v2096_v19  ;;  %v4373_v37 = vld [vmem:[%s4759_s21 + $0x230] sm:$0xff]   ;;  %v4380_v45 = vld [vmem:[%s4759_s21 + $0x2e0] sm:$0xff]   ;;  %v4408_v16 = vld [vmem:[%s4759_s21 + $0x3e8] sm:$0xff]  }
 0x799   : > { %v2037_v49 = vpop.f32.mrf.mxu1  ;;  %v2078_v50 = vpop.f32.mrf.mxu0  ;;  %4018 = vmatprep.subr.bf16.mxu1 %v4351_v41  ;;  %4040 = vmatprep.subr.bf16.mxu0 %v4352_v42  ;;  %v4374_v38 = vld [vmem:[%s4759_s21 + $0x2b0] sm:$0xff]   ;;  %v4377_v41 = vld [vmem:[%s4759_s21 + $0x228] sm:$0xff]   ;;  %v4381_v46 = vld [vmem:[%s4759_s21 + $0x220] sm:$0xff]  }
 0x79a   : > { %v5072_v53 = vadd.f32 %v2037_v49, %v1565_v43  ;;  %v5075_v54 = vadd.f32 %v2078_v50, %v5013_v29  ;;  %v4359_v29 = vld [vmem:[%s4759_s21 + $0x148] sm:$0xff]   ;;  %v4379_v43 = vld [vmem:[%s4759_s21 + $0x260] sm:$0xff]   ;;  %v4384_v49 = vld [vmem:[%s4759_s21 + $0x2d8] sm:$0xff]  }
 0x79b   : > { %v5077_v55 = vpop.f32.mrf.mxu1  ;;  %v5079_v56 = vpop.f32.mrf.mxu0  ;;  %v4378_v42 = vld [vmem:[%s4759_s21 + $0x2a8] sm:$0xff]   ;;  %v4385_v50 = vld [vmem:[%s4759_s21 + $0x218] sm:$0xff]  }
 0x79c   : > { %4019 = vmatpush3.bf16.msra.mxu1 %v4353_v47  ;;  %4041 = vmatpush3.bf16.msra.mxu0 %v4354_v48  ;;  %v4382_v47 = vld [vmem:[%s4759_s21 + $0x2a0] sm:$0xff]   ;;  %v4383_v48 = vld [vmem:[%s4759_s21 + $0x258] sm:$0xff]   ;;  %v4409_v19 = vld [vmem:[%s4759_s21 + $0x328] sm:$0xff]  }
 0x79d   : > { %v2041_v63 = vpop.f32.mrf.mxu1  ;;  %v2082_v0 = vpop.f32.mrf.mxu0  ;;  %4020 = vmatprep.subr.bf16.mxu1 %v4355_v51  ;;  %4042 = vmatprep.subr.bf16.mxu0 %v4356_v52  ;;  %v4386_v51 = vld [vmem:[%s4759_s21 + $0x298] sm:$0xff]   ;;  %v4387_v52 = vld [vmem:[%s4759_s21 + $0x250] sm:$0xff]  }
 0x79e   : > { %v4391_v63 = vld [vmem:[%s4759_s21 + $0x248] sm:$0xff]   ;;  %v1557_v0 = vrot.slane %v5008_v28, %v1524_v17 }
 0x79f   : > { %v2042_v6 = vpop.f32.mrf.mxu1  ;;  %v2083_v7 = vpop.f32.mrf.mxu0  ;;  %v4394_v17 = vld [vmem:[%s4759_s21 + $0x288] sm:$0xff]  }
 0x7a0   : > { %4021 = vmatpush3.bf16.msra.mxu1 %v4357_v57  ;;  %4043 = vmatpush3.bf16.msra.mxu0 %v4358_v58  ;;  %v4388_v57 = vld [vmem:[%s4759_s21 + $0x2d0] sm:$0xff]   ;;  %v4395_v6 = vld [vmem:[%s4759_s21 + $0x240] sm:$0xff]   ;;  %v1997_v7 = vadd.f32 %v5058_v25, %v1557_v0  ;;  %v4400_v25 = vld [vmem:[%s4759_s21 + $0x3f8] sm:$0xff]  }
 0x7a1   : > { %4022 = vmatprep.subr.bf16.mxu1 %v4359_v29  ;;  %4044 = vmatprep.subr.bf16.mxu0 %v4360_v1  ;;  %v4389_v58 = vld [vmem:[%s4759_s21 + $0x210] sm:$0xff]   ;;  %v4392_v29 = vld [vmem:[%s4759_s21 + $0x2c8] sm:$0xff]   ;;  %v1569_v1 = vrot.slane %v5008_v28, %v1536_v44  ;;  %v2081_v28 = vadd.f32 %v5079_v56, %v1577_v21  ;;  %v4397_v44 = vld [vmem:[%s4759_s21 + $0x200] sm:$0xff]  }
 0x7a2   : > { %v2095_v8 = vmax.f32 %v1997_v7, 0.0  ;;  %v4402_v56 = vld [vmem:[%s4759_s21 + $0x3b8] sm:$0xff]  }
 0x7a3   : > { %v2040_v26 = vadd.f32 %v5077_v55, %v1569_v1  ;;  %v4401_v55 = vld [vmem:[%s4759_s21 + $0x338] sm:$0xff]  }
 0x7a4   : > { %4023 = vmatpush3.bf16.msra.mxu1 %v4361_v27  ;;  %4045 = vmatpush3.bf16.msra.mxu0 %v4362_v30  ;;  %v4396_v27 = vld [vmem:[%s4759_s21 + $0x2c0] sm:$0xff]   ;;  %v4399_v30 = vld [vmem:[%s4759_s21 + $0x378] sm:$0xff]   ;;  %v2111_v11 = vpack.c.bf16 %v2095_v8, %v2095_v8 }
 0x7a5   : > { %4024 = vmatprep.subr.bf16.mxu1 %v4363_v18  ;;  %4046 = vmatprep.subr.bf16.mxu0 %v4364_v10  ;;  %v2098_v9 = vmax.f32 %v2040_v26, 0.0  ;;  %v2100_v18 = vmax.f32 %v2081_v28, 0.0  ;;  %v2109_v10 = vpack.c.bf16 %v2093_v5, %v2093_v5 }
 0x7a7   : > { %v2116_v14 = vpack.c.bf16 %v2100_v18, %v2100_v18 }
 0x7a8   : > { %4025 = vmatpush3.bf16.msra.mxu1 %v4365_v12  ;;  %4047 = vmatpush3.bf16.msra.mxu0 %v4366_v3  ;;  %v2114_v12 = vpack.c.bf16 %v2098_v9, %v2098_v9  ;;  %v4404_v3 = vld [vmem:[%s4759_s21 + $0x3f0] sm:$0xff]  }
 0x7a9   : > { %4054 = vmatprep.subr.bf16.mxu1 %v4367_v61  ;;  %4076 = vmatprep.subr.bf16.mxu0 %v4368_v62  ;;  %v4406_v61 = vld [vmem:[%s4759_s21 + $0x3b0] sm:$0xff]   ;;  %v4407_v62 = vld [vmem:[%s4759_s21 + $0x368] sm:$0xff]  }
 0x7ab   : > { %3260 = vmatmul.mubr.bf16.vlgmr.msra.gmra.mxu1 %v2105_v22  ;;  %3300 = vmatmul.mubr.bf16.vlgmr.msra.gmra.mxu0 %v2107_v23  ;;  %v4411_v22 = vld [vmem:[%s4759_s21 + $0x360] sm:$0xff]  }
 0x7ac   : > { %4055 = vmatpush3.bf16.msra.mxu1 %v4369_v20  ;;  %3339 = vmatprep.mubr.bf16.mxu1 %v2110_v33  ;;  %v4410_v20 = vld [vmem:[%s4759_s21 + $0x3a8] sm:$0xff]   ;;  %v4412_v23 = vld [vmem:[%s4759_s21 + $0x3e0] sm:$0xff]  }
 0x7ad   : > { %4077 = vmatpush3.bf16.msra.mxu0 %v4370_v32  ;;  %3379 = vmatprep.mubr.bf16.mxu0 %v2112_v36  ;;  %v4413_v32 = vld [vmem:[%s4759_s21 + $0x320] sm:$0xff]   ;;  %v4417_v36 = vld [vmem:[%s4759_s21 + $0x318] sm:$0xff]  }
 0x7ae   : > { %4056 = vmatprep.subr.bf16.mxu1 %v4371_v34  ;;  %4078 = vmatprep.subr.bf16.mxu0 %v4372_v35  ;;  %v4414_v33 = vld [vmem:[%s4759_s21 + $0x3a0] sm:$0xff]   ;;  %v4415_v34 = vld [vmem:[%s4759_s21 + $0x358] sm:$0xff]  }
 0x7af   : > { %v4416_v35 = vld [vmem:[%s4759_s21 + $0x3d8] sm:$0xff]  }
 0x7b0   : > { %4057 = vmatpush3.bf16.msra.mxu1 %v4373_v37  ;;  %v4418_v37 = vld [vmem:[%s4759_s21 + $0x398] sm:$0xff]  }
 0x7b1   : > { %4079 = vmatpush3.bf16.msra.mxu0 %v4374_v38  ;;  %4058 = vmatprep.subr.bf16.mxu1 %v4375_v39  ;;  %v4419_v38 = vld [vmem:[%s4759_s21 + $0x350] sm:$0xff]  }
 0x7b2   : > { %4080 = vmatprep.subr.bf16.mxu0 %v4376_v40  ;;  %v4420_v39 = vld [vmem:[%s4759_s21 + $0x3d0] sm:$0xff]  }
 0x7b3   : > { %v4421_v40 = vld [vmem:[%s4759_s21 + $0x310] sm:$0xff]  }
 0x7b4   : > { %4059 = vmatpush3.bf16.msra.mxu1 %v4377_v41  ;;  %v4422_v41 = vld [vmem:[%s4759_s21 + $0x390] sm:$0xff]  }
 0x7b5   : > { %4081 = vmatpush3.bf16.msra.mxu0 %v4378_v42  ;;  %4060 = vmatprep.subr.bf16.mxu1 %v4379_v43  ;;  %v4423_v42 = vld [vmem:[%s4759_s21 + $0x348] sm:$0xff]  }
 0x7b6   : > { %4082 = vmatprep.subr.bf16.mxu0 %v4380_v45  ;;  %v4424_v43 = vld [vmem:[%s4759_s21 + $0x3c8] sm:$0xff]  }
 0x7b7   : > { %v4425_v45 = vld [vmem:[%s4759_s21 + $0x308] sm:$0xff]  }
 0x7b8   : > { %4061 = vmatpush3.bf16.msra.mxu1 %v4381_v46  ;;  %v4426_v46 = vld [vmem:[%s4759_s21 + $0x388] sm:$0xff]  }
 0x7b9   : > { %4083 = vmatpush3.bf16.msra.mxu0 %v4382_v47  ;;  %4062 = vmatprep.subr.bf16.mxu1 %v4383_v48  ;;  %v4427_v47 = vld [vmem:[%s4759_s21 + $0x340] sm:$0xff]  }
 0x7ba   : > { %4084 = vmatprep.subr.bf16.mxu0 %v4384_v49  ;;  %v4428_v48 = vld [vmem:[%s4759_s21 + $0x3c0] sm:$0xff]  }
 0x7bb   : > { %v4429_v49 = vld [vmem:[%s4759_s21 + $0x300] sm:$0xff]  }
 0x7bc   : > { %4063 = vmatpush3.bf16.msra.mxu1 %v4385_v50  ;;  %v2097_v50 = vmax.f32 %v5072_v53, 0.0 }
 0x7bd   : > { %4085 = vmatpush3.bf16.msra.mxu0 %v4386_v51  ;;  %4064 = vmatprep.subr.bf16.mxu1 %v4387_v52  ;;  %v4430_v51 = vld [vmem:[%s4759_s21 + $0x380] sm:$0xff]   ;;  %v2099_v52 = vmax.f32 %v5075_v54, 0.0 }
 0x7be   : > { %4086 = vmatprep.subr.bf16.mxu0 %v4388_v57  ;;  %v2113_v57 = vpack.c.bf16 %v2097_v50, %v2097_v50 }
 0x7c0   : > { %4065 = vmatpush3.bf16.msra.mxu1 %v4389_v58  ;;  %v2115_v58 = vpack.c.bf16 %v2099_v52, %v2099_v52 }
 0x7c1   : > { %4087 = vmatpush3.bf16.msra.mxu0 %v4390_v60  ;;  %4066 = vmatprep.subr.bf16.mxu1 %v4391_v63  ;;  %v3798_v63 = vld [vmem:[%s677_s14] ss:$0 sm:$0xff] }
 0x7c2   : > { %4088 = vmatprep.subr.bf16.mxu0 %v4392_v29 }
 0x7c4   : > { %4067 = vmatpush3.bf16.msra.mxu1 %v4393_v2 }
 0x7c5   : > { %4089 = vmatpush3.bf16.msra.mxu0 %v4394_v17  ;;  %4068 = vmatprep.subr.bf16.mxu1 %v4395_v6 }
 0x7c6   : > { %4090 = vmatprep.subr.bf16.mxu0 %v4396_v27 }
 0x7c8   : > { %4069 = vmatpush3.bf16.msra.mxu1 %v4397_v44 }
 0x7c9   : > { %4091 = vmatpush3.bf16.msra.mxu0 %v4398_v24  ;;  %4098 = vmatprep.subr.bf16.mxu1 %v4399_v30 }
 0x7ca   : > { %4120 = vmatprep.subr.bf16.mxu0 %v4400_v25 }
 0x7cb   : > { %3340 = vmatmul.mubr.bf16.vlgmr.msra.gmra.mxu1 %v2109_v10 }
 0x7cc   : > { %3380 = vmatmul.mubr.bf16.vlgmr.msra.gmra.mxu0 %v2111_v11  ;;  %4099 = vmatpush3.bf16.msra.mxu1 %v4401_v55 }
 0x7cd   : > { %3419 = vmatprep.mubr.bf16.mxu1 %v2114_v12  ;;  %4121 = vmatpush3.bf16.msra.mxu0 %v4402_v56 }
 0x7ce   : > { %3459 = vmatprep.mubr.bf16.mxu0 %v2116_v14  ;;  %4100 = vmatprep.subr.bf16.mxu1 %v4403_v31 }
 0x7cf   : > { %4122 = vmatprep.subr.bf16.mxu0 %v4404_v3 }
 0x7d0   : > { %4101 = vmatpush3.bf16.msra.mxu1 %v4405_v15 }
 0x7d1   : > { %4123 = vmatpush3.bf16.msra.mxu0 %v4406_v61  ;;  %4102 = vmatprep.subr.bf16.mxu1 %v4407_v62 }
 0x7d2   : > { %4124 = vmatprep.subr.bf16.mxu0 %v4408_v16 }
 0x7d4   : > { %4103 = vmatpush3.bf16.msra.mxu1 %v4409_v19 }
 0x7d5   : > { %4125 = vmatpush3.bf16.msra.mxu0 %v4410_v20  ;;  %4104 = vmatprep.subr.bf16.mxu1 %v4411_v22 }
 0x7d6   : > { %4126 = vmatprep.subr.bf16.mxu0 %v4412_v23 }
 0x7d8   : > { %4105 = vmatpush3.bf16.msra.mxu1 %v4413_v32 }
 0x7d9   : > { %4127 = vmatpush3.bf16.msra.mxu0 %v4414_v33  ;;  %4106 = vmatprep.subr.bf16.mxu1 %v4415_v34 }
 0x7da   : > { %4128 = vmatprep.subr.bf16.mxu0 %v4416_v35 }
 0x7dc   : > { %4107 = vmatpush3.bf16.msra.mxu1 %v4417_v36 }
 0x7dd   : > { %4129 = vmatpush3.bf16.msra.mxu0 %v4418_v37  ;;  %4108 = vmatprep.subr.bf16.mxu1 %v4419_v38 }
 0x7de   : > { %4130 = vmatprep.subr.bf16.mxu0 %v4420_v39 }
 0x7e0   : > { %4109 = vmatpush3.bf16.msra.mxu1 %v4421_v40 }
 0x7e1   : > { %4131 = vmatpush3.bf16.msra.mxu0 %v4422_v41  ;;  %4110 = vmatprep.subr.bf16.mxu1 %v4423_v42 }
 0x7e2   : > { %4132 = vmatprep.subr.bf16.mxu0 %v4424_v43 }
 0x7e4   : > { %4111 = vmatpush3.bf16.msra.mxu1 %v4425_v45 }
 0x7e5   : > { %4133 = vmatpush3.bf16.msra.mxu0 %v4426_v46  ;;  %4112 = vmatprep.subr.bf16.mxu1 %v4427_v47 }
 0x7e6   : > { %4134 = vmatprep.subr.bf16.mxu0 %v4428_v48 }
 0x7e8   : > { %4113 = vmatpush3.bf16.msra.mxu1 %v4429_v49 }
 0x7e9   : > { %4135 = vmatpush3.bf16.msra.mxu0 %v4430_v51 }
 0x7eb   : > { %3420 = vmatmul.mubr.bf16.vlgmr.msra.gmra.mxu1 %v2113_v57  ;;  %v3928_v57 = vld [vmem:[%s683_s12] ss:$0 sm:$0xff] }
 0x7ec   : > { %3460 = vmatmul.mubr.bf16.vlgmr.msra.gmra.mxu0 %v2115_v58 }
 0x84b   : > { %v3982_v59 = vpop.f32.mrf.mxu1  ;;  %v4004_v60 = vpop.f32.mrf.mxu0 }
 0x84d   : > { %v3983_v53 = vpop.f32.mrf.mxu1  ;;  %v4005_v0 = vpop.f32.mrf.mxu0 }
 0x84e   : > { %v3984_v29 = vadd.f32 %v3983_v53, %v3982_v59  ;;  %v4006_v1 = vadd.f32 %v4005_v0, %v4004_v60 }
 0x84f   : > { %v3985_v21 = vpop.f32.mrf.mxu1  ;;  %v4007_v54 = vpop.f32.mrf.mxu0 }
 0x850   : > { %v3182_v2 = vadd.f32 %v3984_v29, %v3798_v63 }
 0x851   : > { %v3986_v4 = vpop.f32.mrf.mxu1  ;;  %v4008_v17 = vpop.f32.mrf.mxu0 }
 0x852   : > { %v3222_v6 = vadd.f32 %v4006_v1, %v3182_v2 }
 0x86b   : > { %v4026_v7 = vpop.f32.mrf.mxu1  ;;  %v4048_v27 = vpop.f32.mrf.mxu0 }
 0x86d   : > { %v4027_v26 = vpop.f32.mrf.mxu1  ;;  %v4049_v28 = vpop.f32.mrf.mxu0 }
 0x86e   : > { %v4028_v31 = vadd.f32 %v4027_v26, %v4026_v7  ;;  %v4050_v3 = vadd.f32 %v4049_v28, %v4048_v27 }
 0x86f   : > { %v4029_v44 = vpop.f32.mrf.mxu1  ;;  %v4051_v5 = vpop.f32.mrf.mxu0 }
 0x870   : > { %v3262_v12 = vadd.f32 %v4028_v31, %v3222_v6 }
 0x871   : > { %v4030_v24 = vpop.f32.mrf.mxu1  ;;  %v4052_v30 = vpop.f32.mrf.mxu0 }
 0x872   : > { %v3302_v15 = vadd.f32 %v4050_v3, %v3262_v12 }
 0x88b   : > { %v4070_v8 = vpop.f32.mrf.mxu1 }
 0x88c   : > { %v4092_v25 = vpop.f32.mrf.mxu0 }
 0x88d   : > { %v4071_v9 = vpop.f32.mrf.mxu1 }
 0x88e   : > { %v4093_v18 = vpop.f32.mrf.mxu0  ;;  %v4072_v14 = vadd.f32 %v4071_v9, %v4070_v8 }
 0x88f   : > { %v4073_v55 = vpop.f32.mrf.mxu1  ;;  %v4094_v16 = vadd.f32 %v4093_v18, %v4092_v25 }
 0x890   : > { %v4095_v10 = vpop.f32.mrf.mxu0  ;;  %v3342_v61 = vadd.f32 %v4072_v14, %v3302_v15 }
 0x891   : > { %v4074_v56 = vpop.f32.mrf.mxu1 }
 0x892   : > { %v4096_v11 = vpop.f32.mrf.mxu0  ;;  %v3382_v22 = vadd.f32 %v4094_v16, %v3342_v61 }
 0x8ab   : > { %v4114_v62 = vpop.f32.mrf.mxu1 }
 0x8ac   : > { %v4136_v19 = vpop.f32.mrf.mxu0 }
 0x8ad   : > { %v4115_v20 = vpop.f32.mrf.mxu1 }
 0x8ae   : > { %v4116_v23 = vadd.f32 %v4115_v20, %v4114_v62  ;;  %v4137_v32 = vpop.f32.mrf.mxu0 }
 0x8af   : > { %v4117_v33 = vpop.f32.mrf.mxu1  ;;  %v4138_v35 = vadd.f32 %v4137_v32, %v4136_v19 }
 0x8b0   : > { %v3422_v34 = vadd.f32 %v4116_v23, %v3382_v22  ;;  %v4139_v36 = vpop.f32.mrf.mxu0 }
 0x8b1   : > { %v4118_v37 = vpop.f32.mrf.mxu1 }
 0x8b2   : > { %v3462_v38 = vadd.f32 %v4138_v35, %v3422_v34  ;;  %v4140_v39 = vpop.f32.mrf.mxu0 }
 0x8b4   : > { %v3467_v40 = vadd.f32 %v3462_v38, %v4926_v13  ;;  %v3927_v13 = vld [vmem:[%s680_s29] ss:$0 sm:$0xff] }
 0x8b6   : > { %v3468_v41 = vsel %vm731_vm2, %v3467_v40, 0.0 }
 0x8b7   : > { %3469 = vadd.xlane.f32.xlu0 %v3468_v41 }
 0x940   : > { %v3470_v42 = vpop.xlane.xlu0 %3469 }
 0x941   : > { %v3471_v43 = vmul.f32 0.03125, %v3470_v42 }
 0x943   : > { %v3472_v45 = vsub.f32 %v3467_v40, %v3471_v43 }
 0x945   : > { %v3473_v46 = vmul.f32 %v3472_v45, %v3472_v45 }
 0x947   : > { %v3474_v47 = vsel %vm731_vm2, %v3473_v46, 0.0 }
 0x948   : > { %3475 = vadd.xlane.f32.xlu0 %v3474_v47 }
 0x9d1   : > { %v3476_v48 = vpop.xlane.xlu0 %3475 }
 0x9d2   : > { %v3477_v49 = vmul.f32 0.03125, %v3476_v48 }
 0x9d4   : > { %v3478_v50 = vadd.f32 1e-05, %v3477_v49 }
 0x9d6   : > { %4449 = vrsqrt.f32 %v3478_v50 }
 0x9e3   : > { %v4450_v51 = vpop.eup %4449 }
 0x9e4   : > { %v3480_v52 = vmul.f32 %v4450_v51, %v3472_v45  ;;  %3498 = sbr.rel (%p3929_p1) target bundleno = 2539 (0x9eb), region = 84 }
 0x9e6   : > { %v3487_v58 = vmul.f32 %v3927_v13, %v3480_v52 }
 0x9e8   : > { %v3494_v59 = vadd.f32 %v3928_v57, %v3487_v58 }
 0x9ea   : > { %3499 = vst.msk [vmem:[#allocation2] sm:$0xff] %vm731_vm2, %v3494_v59 }
 0x9eb PF: > { %s5330_s19 = sld [smem:[#allocation9_spill]] }
 0x9f1   : > { %p3930_p2 = scmp.ne.s32.totalorder %s5330_s19, 3 }
 0x9f3   : > { %3503 = sbr.rel (%p3930_p2) target bundleno = 2553 (0x9f9), region = 88 }
 0x9f8   : > { %3504 = vst.msk [vmem:[%s631_s2] sm:$0xff] %vm731_vm2, %v3494_v59 }
 0x9f9 PF: > { %s5331_s29 = sld [smem:[#allocation10_spill]]  ;;  %s3519_s16 = sshll.u32 %s631_s2, 4  ;;  %s3520_s16 = int_to_ptr.vmem [resolvable:$true] %s3519_s16 }
 0x9fa   : > { %s5332_s27 = sld [smem:[#allocation7_spill]]  ;;  %s4451_s4 = scalar_lea.vmem %s3520_s16, 128 }
 0x9fb   : > { %s5334_s0 = sld [smem:[#allocation27_spill]]  ;;  %p4452_p4 = scmp.ne.s32.totalorder %s3520_s16, %s4451_s4 }
 0x9fc   : > { %s4553_s15 = smov [#allocation3]  }
 0x9fd   : > { %p4453_p5 = pnand %p4452_p4, %p4678_p3  ;;  %s4455_s20 = sshll.u32 %s4553_s15, 4  ;;  %s4456_s20 = int_to_ptr.vmem [resolvable:$false] %s4455_s20 }
 0x9fe   : > { %s4457_s21 = scalar_lea.vmem %s4456_s20, 256  ;;  %p4458_p7 = scmp.lt.s32.totalorder %s3520_s16, %s4456_s20 }
 0x9ff   : > { %s3932_s30 = sshll.u32 %s5331_s29, 7  ;;  %p4454_p6 = pneg %p4453_p5 }
 0xa00   : > { %s5335_s25 = sand.u32 1, %s5332_s27   ;;  %p4459_p8 = scmp.lt.s32.totalorder %s4457_s21, %s4451_s4 }
 0xa01   : > { %s3517_s9 = scalar_lea.hbm %s5334_s0, %s3932_s30  ;;  %s3506_s26 = scalar_lea.sflag [#allocation4], %s5335_s25 }
 0xa02   : > { %p4460_p10 = por %p4459_p8, %p4458_p7 }
 0xa04   : > { %p4461_p11 = pnand %p4460_p10, %p4454_p6 }
 0xa06   : > { %4464 = shalt.err (!%p4461_p11)
}
 0xa07   : > { %s4465_s14 = scalar_lea.hbm %s3517_s9, 128  ;;  %s4469_s22 = scalar_lea.hbm %s5334_s0, 256 }
 0xa08   : > { %p4466_p12 = scmp.ne.s32.totalorder %s3517_s9, %s4465_s14  ;;  %p4470_p1 = scmp.lt.s32.totalorder %s3517_s9, %s5334_s0 }
 0xa09   : > { %p4471_p2 = scmp.lt.s32.totalorder %s4469_s22, %s4465_s14 }
 0xa0a   : > { %p4467_p13 = pnand %p4466_p12, %p4678_p3 }
 0xa0b   : > { %p4472_p4 = por %p4471_p2, %p4470_p1 }
 0xa0c   : > { %p4468_p0 = pneg %p4467_p13 }
 0xa0e   : > { %p4473_p5 = pnand %p4472_p4, %p4468_p0 }
 0xa10   : > { %4476 = shalt.err (!%p4473_p5)
}
 0xa11   : > { %4222 = dma.vmem_to_hbm [thread:$0]  (%p4678_p3), %s3520_s16, 128, %s3517_s9, %s3506_s26  }
 0xa12 PF: > { %s5336_s1 = sld [smem:[#allocation13_spill]] }
 0xa13   : > { %s5337_s18 = sld [smem:[#allocation6_spill]] }
 0xa18   : > { %p4228_p6 = scmp.ge.s32.totalorder %s5336_s1, 2 }
 0xa19   : > { %s3531_s29 = sand.u32 1, %s5337_s18  }
 0xa1a   : > { %p4225_p7 = pnand %p4228_p6, %p4688_p9  ;;  %s3532_s27 = scalar_lea.sflag [#allocation4], %s3531_s29 }
 0xa1c   : > { %p4226_p8 = pneg %p4225_p7 }
 0xa1e   : > { %4510 = dma.done.wait (%p4226_p8), %s3532_s27, 128  }
 0xa1f   : > { %4512 = vsyncadd (%p4226_p8), %s3532_s27, 4294967168  ;;  %s27_s20 = sadd.s32 1, %s5336_s1   ;;  %s5339_s29 = sld [smem:[#allocation7_spill]] }
 0xa20   : > { %p24_p10 = scmp.ge.s32.totalorder %s27_s20, 10   ;;  %s5340_s30 = sld [smem:[#allocation8_spill]] }
 0xa21   : > { %s5341_s15 = sld [smem:[#allocation18_spill]] }
 0xa22   : > { %s5342_s16 = sld [smem:[#allocation11_spill]]  ;;  %26 = sbr.rel (!%p24_p10) target bundleno = 14 (0xe), region = 162 }
 0xa23   : > { %s5343_s17 = sld [smem:[#allocation12_spill]] }
 0xa24   : > { %s5344_s18 = sld [smem:[#allocation14_spill]] }
 0xa25   : > { %s5345_s19 = sld [smem:[#allocation16_spill]] }
 0xa27   :  { %3537 = vsyncpa [#allocation4], 1 }
 0xa28   :  { %3539 = vsyncpa [#allocation4 + $0x1], 1 }

</bundles_post_ra>
